<compile_context>
chip_gen: v7x
topology: tpu7x:2x2x1
jax: 0.10.0
libtpu: 0.0.40
codegen_flags: <defaults>
</compile_context>

<pallas_src>
import functools
import math

import jax
import jax.numpy as jnp
from jax import lax
from jax.experimental import pallas as pl
from jax.experimental.pallas import tpu as pltpu


def _spatial_attention_kernel(w_ref, x_ref, o_ref, *,
                              kernel_size, height, width, block_batch):
    """One grid step handles a block of `block_batch` batch elements.

    w_ref : SMEM (2*K*K,) f32 -- conv weights; avg-branch taps pre-scaled 1/C
    x_ref : VMEM (B, C, HW)   -- lane-dense input block
    o_ref : VMEM (B, C, HW)   -- lane-dense output block
    """
    K = kernel_size
    P = (K - 1) // 2
    KK = K * K
    H, W = height, width
    HW = H * W
    B = block_batch

    x = x_ref[...]                                       # (B, C, HW) native dtype

    # Per-batch-row channel reductions -> (B, HW).  Sum (not mean): the 1/C is
    # folded into the avg-branch weights host-side.  Accumulate sum in f32;
    # keep max in native dtype and cast only the small result.
    s = jnp.sum(x, axis=1, dtype=jnp.float32)            # (B, HW) channel sum
    mx = jnp.max(x, axis=1).astype(jnp.float32)          # (B, HW) channel max

    # Pack the two conv-input maps along sublanes: rows [0, B) = sum branch,
    # rows [B, 2B) = max branch.  One XLU roll per tap now covers both.
    packed = jnp.concatenate([s, mx], axis=0)            # (2B, HW) f32

    # Hoisted scalar weight reads from SMEM (avg taps already * 1/C).
    wa = [w_ref[t] for t in range(KK)]
    wm = [w_ref[KK + t] for t in range(KK)]

    # Per-sublane-row branch selector for the packed map.
    sub = lax.broadcasted_iota(jnp.int32, (2 * B, 1), 0)
    is_avg = sub < B                                     # (2B, 1) bool

    # Zero-padding boundary masks, built once per step from an in-kernel iota
    # (no extra VMEM input).  Row validity is a contiguous flat range; column
    # validity uses the per-lane column index.
    pos = lax.broadcasted_iota(jnp.int32, (1, HW), 1)
    col = (pos & (W - 1)) if (W & (W - 1)) == 0 else (pos % W)
    row_masks, col_masks = [], []
    for k in range(K):
        d = k - P
        lo_r, hi_r = max(0, -d), min(H, H - d)
        row_masks.append((pos >= lo_r * W) & (pos < hi_r * W))
        lo_c, hi_c = max(0, -d), min(W, W - d)
        col_masks.append((col >= lo_c) & (col < hi_c))

    # KxK cross-correlation over the packed (sum, max) maps, fully unrolled.
    # Each tap: one XLU lane-roll of the packed map + one masked MAC on the
    # VPU, spread over 4 accumulators so the adds can co-issue.
    accs = [jnp.zeros((2 * B, HW), jnp.float32) for _ in range(4)]
    for ki in range(K):
        for kj in range(K):
            t = ki * K + kj
            d = (ki - P) * W + (kj - P)                  # flat offset of tap
            shift = (-d) % HW                            # out[p] = in[p + d]
            rolled = packed if shift == 0 else pltpu.roll(packed, shift, 1)
            w_col = jnp.where(is_avg, wa[t], wm[t])      # (2B, 1) per-row weight
            mask = row_masks[ki] & col_masks[kj]         # (1, HW)
            accs[t % 4] = accs[t % 4] + jnp.where(mask, rolled * w_col, 0.0)

    acc = (accs[0] + accs[1]) + (accs[2] + accs[3])      # (2B, HW) packed
    conv = acc[:B] + acc[B:]                             # (B, HW) avg + max branch
    att = jax.nn.sigmoid(conv)                           # (B, HW) f32

    # Apply + store in native dtype: re-read x from VMEM at the apply point to
    # bound its live range across the unrolled tap loop; lane-dense stores.
    xr = x_ref[...]                                      # (B, C, HW)
    o_ref[...] = (xr * att[:, None, :].astype(xr.dtype)).astype(o_ref.dtype)


def spatial_attention(x, conv_weight, *, kernel_size=7):
    """x: (N, C, H, W); conv_weight: (1, 2, K, K) (OIHW, bias-free)."""
    assert kernel_size % 2 == 1, "same-size output assumes odd kernel_size"
    N, C, H, W = x.shape
    K = kernel_size
    HW = H * W

    # Fold the 1/C of the channel mean into the avg-branch weights so the
    # kernel can use the raw channel sum.
    w = conv_weight.astype(jnp.float32)
    w_flat = jnp.concatenate(
        [(w[0, 0] / C).reshape(-1), w[0, 1].reshape(-1)])        # (2*K*K,)

    # Lane-dense view: H*W maps to lanes, channels to sublanes, batch rows
    # packed per grid step.  Free HBM-side reshape.
    x_flat = x.reshape(N, C, HW)

    B_blk = min(N, 8)
    num_blocks = (N + B_blk - 1) // B_blk

    kernel = functools.partial(
        _spatial_attention_kernel,
        kernel_size=K, height=H, width=W, block_batch=B_blk)

    out_flat = pl.pallas_call(
        kernel,
        out_shape=jax.ShapeDtypeStruct((N, C, HW), x.dtype),
        grid=(num_blocks,),
        in_specs=[
            pl.BlockSpec(memory_space=pltpu.MemorySpace.SMEM),    # conv weights
            pl.BlockSpec((B_blk, C, HW), lambda n: (n, 0, 0)),    # x block
        ],
        out_specs=pl.BlockSpec((B_blk, C, HW), lambda n: (n, 0, 0)),
        compiler_params=pltpu.CompilerParams(
            dimension_semantics=("parallel",),
            vmem_limit_bytes=64 * 1024 * 1024,
        ),
    )(w_flat, x_flat)

    return out_flat.reshape(N, C, H, W)


def _reference(x, conv_weight, kernel_size=7):
    """Pure-JAX reference mirroring the PyTorch forward."""
    avg = jnp.mean(x, axis=1, keepdims=True)
    mx = jnp.max(x, axis=1, keepdims=True)
    cat = jnp.concatenate([avg, mx], axis=1)                      # (N, 2, H, W)
    pad = (kernel_size - 1) // 2
    conv = jax.lax.conv_general_dilated(
        cat, conv_weight,
        window_strides=(1, 1),
        padding=[(pad, pad), (pad, pad)],
        dimension_numbers=("NCHW", "OIHW", "NCHW"),
    )                                                             # (N, 1, H, W)
    att = jax.nn.sigmoid(conv)
    return x * att


if __name__ == "__main__":
    key = jax.random.PRNGKey(0)
    k_x, k_w = jax.random.split(key)

    N, C, H, W = 2, 4, 16, 16
    K = 7

    x = jax.random.normal(k_x, (N, C, H, W), dtype=jnp.float32)

    # Deterministic Conv2d(2, 1, K, bias=False) weight init (PyTorch-style
    # kaiming-uniform bound = 1/sqrt(fan_in) with fan_in = 2*K*K).
    bound = 1.0 / math.sqrt(2 * K * K)
    conv_weight = jax.random.uniform(
        k_w, (1, 2, K, K), dtype=jnp.float32, minval=-bound, maxval=bound
    )

    out = spatial_attention(x, conv_weight, kernel_size=K)
    out = jax.block_until_ready(out)

    ref = _reference(x, conv_weight, kernel_size=K)
    assert out.shape == (N, C, H, W)
    assert jnp.allclose(out, ref, rtol=1e-4, atol=1e-5), (
        "mismatch vs reference: max abs diff "
        f"{float(jnp.max(jnp.abs(out - ref)))}"
    )

    print("KERNEL_OK")
</pallas_src>

<mosaic_0001>
module attributes {stable_mosaic.version = 11 : i64} {
  func.func @_spatial_attention_kernel(%arg0: i32, %arg1: memref<98xf32, #tpu.memory_space<smem>>, %arg2: memref<2x4x256xf32, #tpu.memory_space<vmem>>, %arg3: memref<2x4x256xf32, #tpu.memory_space<vmem>>) attributes {dimension_semantics = [#tpu.dimension_semantics<parallel>], iteration_bounds = array<i64: 1>, scalar_prefetch = 0 : i64, scratch_operands = 0 : i64, tpu.core_type = #tpu.core_type<tc>, window_params = [{transform_indices = @transform_0, window_bounds = array<i64: 98>}, {transform_indices = @transform_1, window_bounds = array<i64: 2, 4, 256>}, {transform_indices = @transform_2, window_bounds = array<i64: 2, 4, 256>}]} {
    %c0 = arith.constant 0 : index
    %c0_0 = arith.constant 0 : index
    %c0_1 = arith.constant 0 : index
    %0 = vector.load %arg2[%c0, %c0_0, %c0_1] : memref<2x4x256xf32, #tpu.memory_space<vmem>>, vector<2x4x256xf32>
    %cst = arith.constant dense<0.000000e+00> : vector<2x256xf32>
    %1 = vector.multi_reduction <add>, %0, %cst [1] : vector<2x4x256xf32> to vector<2x256xf32>
    %cst_2 = arith.constant dense<0xFF800000> : vector<2x256xf32>
    %2 = vector.multi_reduction <maximumf>, %0, %cst_2 [1] : vector<2x4x256xf32> to vector<2x256xf32>
    %3 = tpu.concatenate %1, %2 in 0 : vector<2x256xf32>, vector<2x256xf32> -> vector<4x256xf32>
    %c0_3 = arith.constant 0 : index
    %4 = memref.load %arg1[%c0_3] : memref<98xf32, #tpu.memory_space<smem>>
    %c1 = arith.constant 1 : index
    %5 = memref.load %arg1[%c1] : memref<98xf32, #tpu.memory_space<smem>>
    %c2 = arith.constant 2 : index
    %6 = memref.load %arg1[%c2] : memref<98xf32, #tpu.memory_space<smem>>
    %c3 = arith.constant 3 : index
    %7 = memref.load %arg1[%c3] : memref<98xf32, #tpu.memory_space<smem>>
    %c4 = arith.constant 4 : index
    %8 = memref.load %arg1[%c4] : memref<98xf32, #tpu.memory_space<smem>>
    %c5 = arith.constant 5 : index
    %9 = memref.load %arg1[%c5] : memref<98xf32, #tpu.memory_space<smem>>
    %c6 = arith.constant 6 : index
    %10 = memref.load %arg1[%c6] : memref<98xf32, #tpu.memory_space<smem>>
    %c7 = arith.constant 7 : index
    %11 = memref.load %arg1[%c7] : memref<98xf32, #tpu.memory_space<smem>>
    %c8 = arith.constant 8 : index
    %12 = memref.load %arg1[%c8] : memref<98xf32, #tpu.memory_space<smem>>
    %c9 = arith.constant 9 : index
    %13 = memref.load %arg1[%c9] : memref<98xf32, #tpu.memory_space<smem>>
    %c10 = arith.constant 10 : index
    %14 = memref.load %arg1[%c10] : memref<98xf32, #tpu.memory_space<smem>>
    %c11 = arith.constant 11 : index
    %15 = memref.load %arg1[%c11] : memref<98xf32, #tpu.memory_space<smem>>
    %c12 = arith.constant 12 : index
    %16 = memref.load %arg1[%c12] : memref<98xf32, #tpu.memory_space<smem>>
    %c13 = arith.constant 13 : index
    %17 = memref.load %arg1[%c13] : memref<98xf32, #tpu.memory_space<smem>>
    %c14 = arith.constant 14 : index
    %18 = memref.load %arg1[%c14] : memref<98xf32, #tpu.memory_space<smem>>
    %c15 = arith.constant 15 : index
    %19 = memref.load %arg1[%c15] : memref<98xf32, #tpu.memory_space<smem>>
    %c16 = arith.constant 16 : index
    %20 = memref.load %arg1[%c16] : memref<98xf32, #tpu.memory_space<smem>>
    %c17 = arith.constant 17 : index
    %21 = memref.load %arg1[%c17] : memref<98xf32, #tpu.memory_space<smem>>
    %c18 = arith.constant 18 : index
    %22 = memref.load %arg1[%c18] : memref<98xf32, #tpu.memory_space<smem>>
    %c19 = arith.constant 19 : index
    %23 = memref.load %arg1[%c19] : memref<98xf32, #tpu.memory_space<smem>>
    %c20 = arith.constant 20 : index
    %24 = memref.load %arg1[%c20] : memref<98xf32, #tpu.memory_space<smem>>
    %c21 = arith.constant 21 : index
    %25 = memref.load %arg1[%c21] : memref<98xf32, #tpu.memory_space<smem>>
    %c22 = arith.constant 22 : index
    %26 = memref.load %arg1[%c22] : memref<98xf32, #tpu.memory_space<smem>>
    %c23 = arith.constant 23 : index
    %27 = memref.load %arg1[%c23] : memref<98xf32, #tpu.memory_space<smem>>
    %c24 = arith.constant 24 : index
    %28 = memref.load %arg1[%c24] : memref<98xf32, #tpu.memory_space<smem>>
    %c25 = arith.constant 25 : index
    %29 = memref.load %arg1[%c25] : memref<98xf32, #tpu.memory_space<smem>>
    %c26 = arith.constant 26 : index
    %30 = memref.load %arg1[%c26] : memref<98xf32, #tpu.memory_space<smem>>
    %c27 = arith.constant 27 : index
    %31 = memref.load %arg1[%c27] : memref<98xf32, #tpu.memory_space<smem>>
    %c28 = arith.constant 28 : index
    %32 = memref.load %arg1[%c28] : memref<98xf32, #tpu.memory_space<smem>>
    %c29 = arith.constant 29 : index
    %33 = memref.load %arg1[%c29] : memref<98xf32, #tpu.memory_space<smem>>
    %c30 = arith.constant 30 : index
    %34 = memref.load %arg1[%c30] : memref<98xf32, #tpu.memory_space<smem>>
    %c31 = arith.constant 31 : index
    %35 = memref.load %arg1[%c31] : memref<98xf32, #tpu.memory_space<smem>>
    %c32 = arith.constant 32 : index
    %36 = memref.load %arg1[%c32] : memref<98xf32, #tpu.memory_space<smem>>
    %c33 = arith.constant 33 : index
    %37 = memref.load %arg1[%c33] : memref<98xf32, #tpu.memory_space<smem>>
    %c34 = arith.constant 34 : index
    %38 = memref.load %arg1[%c34] : memref<98xf32, #tpu.memory_space<smem>>
    %c35 = arith.constant 35 : index
    %39 = memref.load %arg1[%c35] : memref<98xf32, #tpu.memory_space<smem>>
    %c36 = arith.constant 36 : index
    %40 = memref.load %arg1[%c36] : memref<98xf32, #tpu.memory_space<smem>>
    %c37 = arith.constant 37 : index
    %41 = memref.load %arg1[%c37] : memref<98xf32, #tpu.memory_space<smem>>
    %c38 = arith.constant 38 : index
    %42 = memref.load %arg1[%c38] : memref<98xf32, #tpu.memory_space<smem>>
    %c39 = arith.constant 39 : index
    %43 = memref.load %arg1[%c39] : memref<98xf32, #tpu.memory_space<smem>>
    %c40 = arith.constant 40 : index
    %44 = memref.load %arg1[%c40] : memref<98xf32, #tpu.memory_space<smem>>
    %c41 = arith.constant 41 : index
    %45 = memref.load %arg1[%c41] : memref<98xf32, #tpu.memory_space<smem>>
    %c42 = arith.constant 42 : index
    %46 = memref.load %arg1[%c42] : memref<98xf32, #tpu.memory_space<smem>>
    %c43 = arith.constant 43 : index
    %47 = memref.load %arg1[%c43] : memref<98xf32, #tpu.memory_space<smem>>
    %c44 = arith.constant 44 : index
    %48 = memref.load %arg1[%c44] : memref<98xf32, #tpu.memory_space<smem>>
    %c45 = arith.constant 45 : index
    %49 = memref.load %arg1[%c45] : memref<98xf32, #tpu.memory_space<smem>>
    %c46 = arith.constant 46 : index
    %50 = memref.load %arg1[%c46] : memref<98xf32, #tpu.memory_space<smem>>
    %c47 = arith.constant 47 : index
    %51 = memref.load %arg1[%c47] : memref<98xf32, #tpu.memory_space<smem>>
    %c48 = arith.constant 48 : index
    %52 = memref.load %arg1[%c48] : memref<98xf32, #tpu.memory_space<smem>>
    %c49 = arith.constant 49 : index
    %53 = memref.load %arg1[%c49] : memref<98xf32, #tpu.memory_space<smem>>
    %c50 = arith.constant 50 : index
    %54 = memref.load %arg1[%c50] : memref<98xf32, #tpu.memory_space<smem>>
    %c51 = arith.constant 51 : index
    %55 = memref.load %arg1[%c51] : memref<98xf32, #tpu.memory_space<smem>>
    %c52 = arith.constant 52 : index
    %56 = memref.load %arg1[%c52] : memref<98xf32, #tpu.memory_space<smem>>
    %c53 = arith.constant 53 : index
    %57 = memref.load %arg1[%c53] : memref<98xf32, #tpu.memory_space<smem>>
    %c54 = arith.constant 54 : index
    %58 = memref.load %arg1[%c54] : memref<98xf32, #tpu.memory_space<smem>>
    %c55 = arith.constant 55 : index
    %59 = memref.load %arg1[%c55] : memref<98xf32, #tpu.memory_space<smem>>
    %c56 = arith.constant 56 : index
    %60 = memref.load %arg1[%c56] : memref<98xf32, #tpu.memory_space<smem>>
    %c57 = arith.constant 57 : index
    %61 = memref.load %arg1[%c57] : memref<98xf32, #tpu.memory_space<smem>>
    %c58 = arith.constant 58 : index
    %62 = memref.load %arg1[%c58] : memref<98xf32, #tpu.memory_space<smem>>
    %c59 = arith.constant 59 : index
    %63 = memref.load %arg1[%c59] : memref<98xf32, #tpu.memory_space<smem>>
    %c60 = arith.constant 60 : index
    %64 = memref.load %arg1[%c60] : memref<98xf32, #tpu.memory_space<smem>>
    %c61 = arith.constant 61 : index
    %65 = memref.load %arg1[%c61] : memref<98xf32, #tpu.memory_space<smem>>
    %c62 = arith.constant 62 : index
    %66 = memref.load %arg1[%c62] : memref<98xf32, #tpu.memory_space<smem>>
    %c63 = arith.constant 63 : index
    %67 = memref.load %arg1[%c63] : memref<98xf32, #tpu.memory_space<smem>>
    %c64 = arith.constant 64 : index
    %68 = memref.load %arg1[%c64] : memref<98xf32, #tpu.memory_space<smem>>
    %c65 = arith.constant 65 : index
    %69 = memref.load %arg1[%c65] : memref<98xf32, #tpu.memory_space<smem>>
    %c66 = arith.constant 66 : index
    %70 = memref.load %arg1[%c66] : memref<98xf32, #tpu.memory_space<smem>>
    %c67 = arith.constant 67 : index
    %71 = memref.load %arg1[%c67] : memref<98xf32, #tpu.memory_space<smem>>
    %c68 = arith.constant 68 : index
    %72 = memref.load %arg1[%c68] : memref<98xf32, #tpu.memory_space<smem>>
    %c69 = arith.constant 69 : index
    %73 = memref.load %arg1[%c69] : memref<98xf32, #tpu.memory_space<smem>>
    %c70 = arith.constant 70 : index
    %74 = memref.load %arg1[%c70] : memref<98xf32, #tpu.memory_space<smem>>
    %c71 = arith.constant 71 : index
    %75 = memref.load %arg1[%c71] : memref<98xf32, #tpu.memory_space<smem>>
    %c72 = arith.constant 72 : index
    %76 = memref.load %arg1[%c72] : memref<98xf32, #tpu.memory_space<smem>>
    %c73 = arith.constant 73 : index
    %77 = memref.load %arg1[%c73] : memref<98xf32, #tpu.memory_space<smem>>
    %c74 = arith.constant 74 : index
    %78 = memref.load %arg1[%c74] : memref<98xf32, #tpu.memory_space<smem>>
    %c75 = arith.constant 75 : index
    %79 = memref.load %arg1[%c75] : memref<98xf32, #tpu.memory_space<smem>>
    %c76 = arith.constant 76 : index
    %80 = memref.load %arg1[%c76] : memref<98xf32, #tpu.memory_space<smem>>
    %c77 = arith.constant 77 : index
    %81 = memref.load %arg1[%c77] : memref<98xf32, #tpu.memory_space<smem>>
    %c78 = arith.constant 78 : index
    %82 = memref.load %arg1[%c78] : memref<98xf32, #tpu.memory_space<smem>>
    %c79 = arith.constant 79 : index
    %83 = memref.load %arg1[%c79] : memref<98xf32, #tpu.memory_space<smem>>
    %c80 = arith.constant 80 : index
    %84 = memref.load %arg1[%c80] : memref<98xf32, #tpu.memory_space<smem>>
    %c81 = arith.constant 81 : index
    %85 = memref.load %arg1[%c81] : memref<98xf32, #tpu.memory_space<smem>>
    %c82 = arith.constant 82 : index
    %86 = memref.load %arg1[%c82] : memref<98xf32, #tpu.memory_space<smem>>
    %c83 = arith.constant 83 : index
    %87 = memref.load %arg1[%c83] : memref<98xf32, #tpu.memory_space<smem>>
    %c84 = arith.constant 84 : index
    %88 = memref.load %arg1[%c84] : memref<98xf32, #tpu.memory_space<smem>>
    %c85 = arith.constant 85 : index
    %89 = memref.load %arg1[%c85] : memref<98xf32, #tpu.memory_space<smem>>
    %c86 = arith.constant 86 : index
    %90 = memref.load %arg1[%c86] : memref<98xf32, #tpu.memory_space<smem>>
    %c87 = arith.constant 87 : index
    %91 = memref.load %arg1[%c87] : memref<98xf32, #tpu.memory_space<smem>>
    %c88 = arith.constant 88 : index
    %92 = memref.load %arg1[%c88] : memref<98xf32, #tpu.memory_space<smem>>
    %c89 = arith.constant 89 : index
    %93 = memref.load %arg1[%c89] : memref<98xf32, #tpu.memory_space<smem>>
    %c90 = arith.constant 90 : index
    %94 = memref.load %arg1[%c90] : memref<98xf32, #tpu.memory_space<smem>>
    %c91 = arith.constant 91 : index
    %95 = memref.load %arg1[%c91] : memref<98xf32, #tpu.memory_space<smem>>
    %c92 = arith.constant 92 : index
    %96 = memref.load %arg1[%c92] : memref<98xf32, #tpu.memory_space<smem>>
    %c93 = arith.constant 93 : index
    %97 = memref.load %arg1[%c93] : memref<98xf32, #tpu.memory_space<smem>>
    %c94 = arith.constant 94 : index
    %98 = memref.load %arg1[%c94] : memref<98xf32, #tpu.memory_space<smem>>
    %c95 = arith.constant 95 : index
    %99 = memref.load %arg1[%c95] : memref<98xf32, #tpu.memory_space<smem>>
    %c96 = arith.constant 96 : index
    %100 = memref.load %arg1[%c96] : memref<98xf32, #tpu.memory_space<smem>>
    %c97 = arith.constant 97 : index
    %101 = memref.load %arg1[%c97] : memref<98xf32, #tpu.memory_space<smem>>
    %102 = tpu.iota {dimensions = array<i32: 0>} : vector<4x1xi32>
    %c2_i32 = arith.constant 2 : i32
    %103 = vector.broadcast %c2_i32 : i32 to vector<4x1xi32>
    %104 = arith.cmpi slt, %102, %103 : vector<4x1xi32>
    %105 = tpu.iota {dimensions = array<i32: 1>} : vector<1x256xi32>
    %c15_i32 = arith.constant 15 : i32
    %106 = vector.broadcast %c15_i32 : i32 to vector<1x256xi32>
    %107 = arith.andi %105, %106 : vector<1x256xi32>
    %c48_i32 = arith.constant 48 : i32
    %108 = vector.broadcast %c48_i32 : i32 to vector<1x256xi32>
    %109 = arith.cmpi sge, %105, %108 : vector<1x256xi32>
    %c256_i32 = arith.constant 256 : i32
    %110 = vector.broadcast %c256_i32 : i32 to vector<1x256xi32>
    %111 = arith.cmpi slt, %105, %110 : vector<1x256xi32>
    %112 = arith.andi %109, %111 : vector<1x256xi1>
    %c3_i32 = arith.constant 3 : i32
    %113 = vector.broadcast %c3_i32 : i32 to vector<1x256xi32>
    %114 = arith.cmpi sge, %107, %113 : vector<1x256xi32>
    %c16_i32 = arith.constant 16 : i32
    %115 = vector.broadcast %c16_i32 : i32 to vector<1x256xi32>
    %116 = arith.cmpi slt, %107, %115 : vector<1x256xi32>
    %117 = arith.andi %114, %116 : vector<1x256xi1>
    %c32_i32 = arith.constant 32 : i32
    %118 = vector.broadcast %c32_i32 : i32 to vector<1x256xi32>
    %119 = arith.cmpi sge, %105, %118 : vector<1x256xi32>
    %c256_i32_4 = arith.constant 256 : i32
    %120 = vector.broadcast %c256_i32_4 : i32 to vector<1x256xi32>
    %121 = arith.cmpi slt, %105, %120 : vector<1x256xi32>
    %122 = arith.andi %119, %121 : vector<1x256xi1>
    %c2_i32_5 = arith.constant 2 : i32
    %123 = vector.broadcast %c2_i32_5 : i32 to vector<1x256xi32>
    %124 = arith.cmpi sge, %107, %123 : vector<1x256xi32>
    %c16_i32_6 = arith.constant 16 : i32
    %125 = vector.broadcast %c16_i32_6 : i32 to vector<1x256xi32>
    %126 = arith.cmpi slt, %107, %125 : vector<1x256xi32>
    %127 = arith.andi %124, %126 : vector<1x256xi1>
    %c16_i32_7 = arith.constant 16 : i32
    %128 = vector.broadcast %c16_i32_7 : i32 to vector<1x256xi32>
    %129 = arith.cmpi sge, %105, %128 : vector<1x256xi32>
    %c256_i32_8 = arith.constant 256 : i32
    %130 = vector.broadcast %c256_i32_8 : i32 to vector<1x256xi32>
    %131 = arith.cmpi slt, %105, %130 : vector<1x256xi32>
    %132 = arith.andi %129, %131 : vector<1x256xi1>
    %c1_i32 = arith.constant 1 : i32
    %133 = vector.broadcast %c1_i32 : i32 to vector<1x256xi32>
    %134 = arith.cmpi sge, %107, %133 : vector<1x256xi32>
    %c16_i32_9 = arith.constant 16 : i32
    %135 = vector.broadcast %c16_i32_9 : i32 to vector<1x256xi32>
    %136 = arith.cmpi slt, %107, %135 : vector<1x256xi32>
    %137 = arith.andi %134, %136 : vector<1x256xi1>
    %c0_i32 = arith.constant 0 : i32
    %138 = vector.broadcast %c0_i32 : i32 to vector<1x256xi32>
    %139 = arith.cmpi sge, %105, %138 : vector<1x256xi32>
    %c256_i32_10 = arith.constant 256 : i32
    %140 = vector.broadcast %c256_i32_10 : i32 to vector<1x256xi32>
    %141 = arith.cmpi slt, %105, %140 : vector<1x256xi32>
    %142 = arith.andi %139, %141 : vector<1x256xi1>
    %c0_i32_11 = arith.constant 0 : i32
    %143 = vector.broadcast %c0_i32_11 : i32 to vector<1x256xi32>
    %144 = arith.cmpi sge, %107, %143 : vector<1x256xi32>
    %c16_i32_12 = arith.constant 16 : i32
    %145 = vector.broadcast %c16_i32_12 : i32 to vector<1x256xi32>
    %146 = arith.cmpi slt, %107, %145 : vector<1x256xi32>
    %147 = arith.andi %144, %146 : vector<1x256xi1>
    %c0_i32_13 = arith.constant 0 : i32
    %148 = vector.broadcast %c0_i32_13 : i32 to vector<1x256xi32>
    %149 = arith.cmpi sge, %105, %148 : vector<1x256xi32>
    %c240_i32 = arith.constant 240 : i32
    %150 = vector.broadcast %c240_i32 : i32 to vector<1x256xi32>
    %151 = arith.cmpi slt, %105, %150 : vector<1x256xi32>
    %152 = arith.andi %149, %151 : vector<1x256xi1>
    %c0_i32_14 = arith.constant 0 : i32
    %153 = vector.broadcast %c0_i32_14 : i32 to vector<1x256xi32>
    %154 = arith.cmpi sge, %107, %153 : vector<1x256xi32>
    %c15_i32_15 = arith.constant 15 : i32
    %155 = vector.broadcast %c15_i32_15 : i32 to vector<1x256xi32>
    %156 = arith.cmpi slt, %107, %155 : vector<1x256xi32>
    %157 = arith.andi %154, %156 : vector<1x256xi1>
    %c0_i32_16 = arith.constant 0 : i32
    %158 = vector.broadcast %c0_i32_16 : i32 to vector<1x256xi32>
    %159 = arith.cmpi sge, %105, %158 : vector<1x256xi32>
    %c224_i32 = arith.constant 224 : i32
    %160 = vector.broadcast %c224_i32 : i32 to vector<1x256xi32>
    %161 = arith.cmpi slt, %105, %160 : vector<1x256xi32>
    %162 = arith.andi %159, %161 : vector<1x256xi1>
    %c0_i32_17 = arith.constant 0 : i32
    %163 = vector.broadcast %c0_i32_17 : i32 to vector<1x256xi32>
    %164 = arith.cmpi sge, %107, %163 : vector<1x256xi32>
    %c14_i32 = arith.constant 14 : i32
    %165 = vector.broadcast %c14_i32 : i32 to vector<1x256xi32>
    %166 = arith.cmpi slt, %107, %165 : vector<1x256xi32>
    %167 = arith.andi %164, %166 : vector<1x256xi1>
    %c0_i32_18 = arith.constant 0 : i32
    %168 = vector.broadcast %c0_i32_18 : i32 to vector<1x256xi32>
    %169 = arith.cmpi sge, %105, %168 : vector<1x256xi32>
    %c208_i32 = arith.constant 208 : i32
    %170 = vector.broadcast %c208_i32 : i32 to vector<1x256xi32>
    %171 = arith.cmpi slt, %105, %170 : vector<1x256xi32>
    %172 = arith.andi %169, %171 : vector<1x256xi1>
    %c0_i32_19 = arith.constant 0 : i32
    %173 = vector.broadcast %c0_i32_19 : i32 to vector<1x256xi32>
    %174 = arith.cmpi sge, %107, %173 : vector<1x256xi32>
    %c13_i32 = arith.constant 13 : i32
    %175 = vector.broadcast %c13_i32 : i32 to vector<1x256xi32>
    %176 = arith.cmpi slt, %107, %175 : vector<1x256xi32>
    %177 = arith.andi %174, %176 : vector<1x256xi1>
    %cst_20 = arith.constant 0.000000e+00 : f32
    %178 = vector.broadcast %cst_20 : f32 to vector<4x256xf32>
    %cst_21 = arith.constant 0.000000e+00 : f32
    %179 = vector.broadcast %cst_21 : f32 to vector<4x256xf32>
    %cst_22 = arith.constant 0.000000e+00 : f32
    %180 = vector.broadcast %cst_22 : f32 to vector<4x256xf32>
    %cst_23 = arith.constant 0.000000e+00 : f32
    %181 = vector.broadcast %cst_23 : f32 to vector<4x256xf32>
    %c51_i32 = arith.constant 51 : i32
    %182 = tpu.dynamic_rotate %3 by %c51_i32 dim 1 : vector<4x256xf32>, i32 -> vector<4x256xf32>
    %183 = vector.broadcast %4 : f32 to vector<4x1xf32>
    %184 = vector.broadcast %53 : f32 to vector<4x1xf32>
    %185 = arith.select %104, %183, %184 : vector<4x1xi1>, vector<4x1xf32>
    %186 = arith.andi %112, %117 : vector<1x256xi1>
    %187 = vector.broadcast %185 : vector<4x1xf32> to vector<4x256xf32>
    %188 = arith.mulf %182, %187 : vector<4x256xf32>
    %cst_24 = arith.constant 0.000000e+00 : f32
    %189 = vector.shape_cast %186 : vector<1x256xi1> to vector<1x256xi1>
    %190 = vector.broadcast %189 : vector<1x256xi1> to vector<4x256xi1>
    %191 = vector.broadcast %cst_24 : f32 to vector<4x256xf32>
    %192 = arith.select %190, %188, %191 : vector<4x256xi1>, vector<4x256xf32>
    %193 = arith.addf %178, %192 : vector<4x256xf32>
    %c50_i32 = arith.constant 50 : i32
    %194 = tpu.dynamic_rotate %3 by %c50_i32 dim 1 : vector<4x256xf32>, i32 -> vector<4x256xf32>
    %195 = vector.broadcast %5 : f32 to vector<4x1xf32>
    %196 = vector.broadcast %54 : f32 to vector<4x1xf32>
    %197 = arith.select %104, %195, %196 : vector<4x1xi1>, vector<4x1xf32>
    %198 = arith.andi %112, %127 : vector<1x256xi1>
    %199 = vector.broadcast %197 : vector<4x1xf32> to vector<4x256xf32>
    %200 = arith.mulf %194, %199 : vector<4x256xf32>
    %cst_25 = arith.constant 0.000000e+00 : f32
    %201 = vector.shape_cast %198 : vector<1x256xi1> to vector<1x256xi1>
    %202 = vector.broadcast %201 : vector<1x256xi1> to vector<4x256xi1>
    %203 = vector.broadcast %cst_25 : f32 to vector<4x256xf32>
    %204 = arith.select %202, %200, %203 : vector<4x256xi1>, vector<4x256xf32>
    %205 = arith.addf %179, %204 : vector<4x256xf32>
    %c49_i32 = arith.constant 49 : i32
    %206 = tpu.dynamic_rotate %3 by %c49_i32 dim 1 : vector<4x256xf32>, i32 -> vector<4x256xf32>
    %207 = vector.broadcast %6 : f32 to vector<4x1xf32>
    %208 = vector.broadcast %55 : f32 to vector<4x1xf32>
    %209 = arith.select %104, %207, %208 : vector<4x1xi1>, vector<4x1xf32>
    %210 = arith.andi %112, %137 : vector<1x256xi1>
    %211 = vector.broadcast %209 : vector<4x1xf32> to vector<4x256xf32>
    %212 = arith.mulf %206, %211 : vector<4x256xf32>
    %cst_26 = arith.constant 0.000000e+00 : f32
    %213 = vector.shape_cast %210 : vector<1x256xi1> to vector<1x256xi1>
    %214 = vector.broadcast %213 : vector<1x256xi1> to vector<4x256xi1>
    %215 = vector.broadcast %cst_26 : f32 to vector<4x256xf32>
    %216 = arith.select %214, %212, %215 : vector<4x256xi1>, vector<4x256xf32>
    %217 = arith.addf %180, %216 : vector<4x256xf32>
    %c48_i32_27 = arith.constant 48 : i32
    %218 = tpu.dynamic_rotate %3 by %c48_i32_27 dim 1 : vector<4x256xf32>, i32 -> vector<4x256xf32>
    %219 = vector.broadcast %7 : f32 to vector<4x1xf32>
    %220 = vector.broadcast %56 : f32 to vector<4x1xf32>
    %221 = arith.select %104, %219, %220 : vector<4x1xi1>, vector<4x1xf32>
    %222 = arith.andi %112, %147 : vector<1x256xi1>
    %223 = vector.broadcast %221 : vector<4x1xf32> to vector<4x256xf32>
    %224 = arith.mulf %218, %223 : vector<4x256xf32>
    %cst_28 = arith.constant 0.000000e+00 : f32
    %225 = vector.shape_cast %222 : vector<1x256xi1> to vector<1x256xi1>
    %226 = vector.broadcast %225 : vector<1x256xi1> to vector<4x256xi1>
    %227 = vector.broadcast %cst_28 : f32 to vector<4x256xf32>
    %228 = arith.select %226, %224, %227 : vector<4x256xi1>, vector<4x256xf32>
    %229 = arith.addf %181, %228 : vector<4x256xf32>
    %c47_i32 = arith.constant 47 : i32
    %230 = tpu.dynamic_rotate %3 by %c47_i32 dim 1 : vector<4x256xf32>, i32 -> vector<4x256xf32>
    %231 = vector.broadcast %8 : f32 to vector<4x1xf32>
    %232 = vector.broadcast %57 : f32 to vector<4x1xf32>
    %233 = arith.select %104, %231, %232 : vector<4x1xi1>, vector<4x1xf32>
    %234 = arith.andi %112, %157 : vector<1x256xi1>
    %235 = vector.broadcast %233 : vector<4x1xf32> to vector<4x256xf32>
    %236 = arith.mulf %230, %235 : vector<4x256xf32>
    %cst_29 = arith.constant 0.000000e+00 : f32
    %237 = vector.shape_cast %234 : vector<1x256xi1> to vector<1x256xi1>
    %238 = vector.broadcast %237 : vector<1x256xi1> to vector<4x256xi1>
    %239 = vector.broadcast %cst_29 : f32 to vector<4x256xf32>
    %240 = arith.select %238, %236, %239 : vector<4x256xi1>, vector<4x256xf32>
    %241 = arith.addf %193, %240 : vector<4x256xf32>
    %c46_i32 = arith.constant 46 : i32
    %242 = tpu.dynamic_rotate %3 by %c46_i32 dim 1 : vector<4x256xf32>, i32 -> vector<4x256xf32>
    %243 = vector.broadcast %9 : f32 to vector<4x1xf32>
    %244 = vector.broadcast %58 : f32 to vector<4x1xf32>
    %245 = arith.select %104, %243, %244 : vector<4x1xi1>, vector<4x1xf32>
    %246 = arith.andi %112, %167 : vector<1x256xi1>
    %247 = vector.broadcast %245 : vector<4x1xf32> to vector<4x256xf32>
    %248 = arith.mulf %242, %247 : vector<4x256xf32>
    %cst_30 = arith.constant 0.000000e+00 : f32
    %249 = vector.shape_cast %246 : vector<1x256xi1> to vector<1x256xi1>
    %250 = vector.broadcast %249 : vector<1x256xi1> to vector<4x256xi1>
    %251 = vector.broadcast %cst_30 : f32 to vector<4x256xf32>
    %252 = arith.select %250, %248, %251 : vector<4x256xi1>, vector<4x256xf32>
    %253 = arith.addf %205, %252 : vector<4x256xf32>
    %c45_i32 = arith.constant 45 : i32
    %254 = tpu.dynamic_rotate %3 by %c45_i32 dim 1 : vector<4x256xf32>, i32 -> vector<4x256xf32>
    %255 = vector.broadcast %10 : f32 to vector<4x1xf32>
    %256 = vector.broadcast %59 : f32 to vector<4x1xf32>
    %257 = arith.select %104, %255, %256 : vector<4x1xi1>, vector<4x1xf32>
    %258 = arith.andi %112, %177 : vector<1x256xi1>
    %259 = vector.broadcast %257 : vector<4x1xf32> to vector<4x256xf32>
    %260 = arith.mulf %254, %259 : vector<4x256xf32>
    %cst_31 = arith.constant 0.000000e+00 : f32
    %261 = vector.shape_cast %258 : vector<1x256xi1> to vector<1x256xi1>
    %262 = vector.broadcast %261 : vector<1x256xi1> to vector<4x256xi1>
    %263 = vector.broadcast %cst_31 : f32 to vector<4x256xf32>
    %264 = arith.select %262, %260, %263 : vector<4x256xi1>, vector<4x256xf32>
    %265 = arith.addf %217, %264 : vector<4x256xf32>
    %c35_i32 = arith.constant 35 : i32
    %266 = tpu.dynamic_rotate %3 by %c35_i32 dim 1 : vector<4x256xf32>, i32 -> vector<4x256xf32>
    %267 = vector.broadcast %11 : f32 to vector<4x1xf32>
    %268 = vector.broadcast %60 : f32 to vector<4x1xf32>
    %269 = arith.select %104, %267, %268 : vector<4x1xi1>, vector<4x1xf32>
    %270 = arith.andi %122, %117 : vector<1x256xi1>
    %271 = vector.broadcast %269 : vector<4x1xf32> to vector<4x256xf32>
    %272 = arith.mulf %266, %271 : vector<4x256xf32>
    %cst_32 = arith.constant 0.000000e+00 : f32
    %273 = vector.shape_cast %270 : vector<1x256xi1> to vector<1x256xi1>
    %274 = vector.broadcast %273 : vector<1x256xi1> to vector<4x256xi1>
    %275 = vector.broadcast %cst_32 : f32 to vector<4x256xf32>
    %276 = arith.select %274, %272, %275 : vector<4x256xi1>, vector<4x256xf32>
    %277 = arith.addf %229, %276 : vector<4x256xf32>
    %c34_i32 = arith.constant 34 : i32
    %278 = tpu.dynamic_rotate %3 by %c34_i32 dim 1 : vector<4x256xf32>, i32 -> vector<4x256xf32>
    %279 = vector.broadcast %12 : f32 to vector<4x1xf32>
    %280 = vector.broadcast %61 : f32 to vector<4x1xf32>
    %281 = arith.select %104, %279, %280 : vector<4x1xi1>, vector<4x1xf32>
    %282 = arith.andi %122, %127 : vector<1x256xi1>
    %283 = vector.broadcast %281 : vector<4x1xf32> to vector<4x256xf32>
    %284 = arith.mulf %278, %283 : vector<4x256xf32>
    %cst_33 = arith.constant 0.000000e+00 : f32
    %285 = vector.shape_cast %282 : vector<1x256xi1> to vector<1x256xi1>
    %286 = vector.broadcast %285 : vector<1x256xi1> to vector<4x256xi1>
    %287 = vector.broadcast %cst_33 : f32 to vector<4x256xf32>
    %288 = arith.select %286, %284, %287 : vector<4x256xi1>, vector<4x256xf32>
    %289 = arith.addf %241, %288 : vector<4x256xf32>
    %c33_i32 = arith.constant 33 : i32
    %290 = tpu.dynamic_rotate %3 by %c33_i32 dim 1 : vector<4x256xf32>, i32 -> vector<4x256xf32>
    %291 = vector.broadcast %13 : f32 to vector<4x1xf32>
    %292 = vector.broadcast %62 : f32 to vector<4x1xf32>
    %293 = arith.select %104, %291, %292 : vector<4x1xi1>, vector<4x1xf32>
    %294 = arith.andi %122, %137 : vector<1x256xi1>
    %295 = vector.broadcast %293 : vector<4x1xf32> to vector<4x256xf32>
    %296 = arith.mulf %290, %295 : vector<4x256xf32>
    %cst_34 = arith.constant 0.000000e+00 : f32
    %297 = vector.shape_cast %294 : vector<1x256xi1> to vector<1x256xi1>
    %298 = vector.broadcast %297 : vector<1x256xi1> to vector<4x256xi1>
    %299 = vector.broadcast %cst_34 : f32 to vector<4x256xf32>
    %300 = arith.select %298, %296, %299 : vector<4x256xi1>, vector<4x256xf32>
    %301 = arith.addf %253, %300 : vector<4x256xf32>
    %c32_i32_35 = arith.constant 32 : i32
    %302 = tpu.dynamic_rotate %3 by %c32_i32_35 dim 1 : vector<4x256xf32>, i32 -> vector<4x256xf32>
    %303 = vector.broadcast %14 : f32 to vector<4x1xf32>
    %304 = vector.broadcast %63 : f32 to vector<4x1xf32>
    %305 = arith.select %104, %303, %304 : vector<4x1xi1>, vector<4x1xf32>
    %306 = arith.andi %122, %147 : vector<1x256xi1>
    %307 = vector.broadcast %305 : vector<4x1xf32> to vector<4x256xf32>
    %308 = arith.mulf %302, %307 : vector<4x256xf32>
    %cst_36 = arith.constant 0.000000e+00 : f32
    %309 = vector.shape_cast %306 : vector<1x256xi1> to vector<1x256xi1>
    %310 = vector.broadcast %309 : vector<1x256xi1> to vector<4x256xi1>
    %311 = vector.broadcast %cst_36 : f32 to vector<4x256xf32>
    %312 = arith.select %310, %308, %311 : vector<4x256xi1>, vector<4x256xf32>
    %313 = arith.addf %265, %312 : vector<4x256xf32>
    %c31_i32 = arith.constant 31 : i32
    %314 = tpu.dynamic_rotate %3 by %c31_i32 dim 1 : vector<4x256xf32>, i32 -> vector<4x256xf32>
    %315 = vector.broadcast %15 : f32 to vector<4x1xf32>
    %316 = vector.broadcast %64 : f32 to vector<4x1xf32>
    %317 = arith.select %104, %315, %316 : vector<4x1xi1>, vector<4x1xf32>
    %318 = arith.andi %122, %157 : vector<1x256xi1>
    %319 = vector.broadcast %317 : vector<4x1xf32> to vector<4x256xf32>
    %320 = arith.mulf %314, %319 : vector<4x256xf32>
    %cst_37 = arith.constant 0.000000e+00 : f32
    %321 = vector.shape_cast %318 : vector<1x256xi1> to vector<1x256xi1>
    %322 = vector.broadcast %321 : vector<1x256xi1> to vector<4x256xi1>
    %323 = vector.broadcast %cst_37 : f32 to vector<4x256xf32>
    %324 = arith.select %322, %320, %323 : vector<4x256xi1>, vector<4x256xf32>
    %325 = arith.addf %277, %324 : vector<4x256xf32>
    %c30_i32 = arith.constant 30 : i32
    %326 = tpu.dynamic_rotate %3 by %c30_i32 dim 1 : vector<4x256xf32>, i32 -> vector<4x256xf32>
    %327 = vector.broadcast %16 : f32 to vector<4x1xf32>
    %328 = vector.broadcast %65 : f32 to vector<4x1xf32>
    %329 = arith.select %104, %327, %328 : vector<4x1xi1>, vector<4x1xf32>
    %330 = arith.andi %122, %167 : vector<1x256xi1>
    %331 = vector.broadcast %329 : vector<4x1xf32> to vector<4x256xf32>
    %332 = arith.mulf %326, %331 : vector<4x256xf32>
    %cst_38 = arith.constant 0.000000e+00 : f32
    %333 = vector.shape_cast %330 : vector<1x256xi1> to vector<1x256xi1>
    %334 = vector.broadcast %333 : vector<1x256xi1> to vector<4x256xi1>
    %335 = vector.broadcast %cst_38 : f32 to vector<4x256xf32>
    %336 = arith.select %334, %332, %335 : vector<4x256xi1>, vector<4x256xf32>
    %337 = arith.addf %289, %336 : vector<4x256xf32>
    %c29_i32 = arith.constant 29 : i32
    %338 = tpu.dynamic_rotate %3 by %c29_i32 dim 1 : vector<4x256xf32>, i32 -> vector<4x256xf32>
    %339 = vector.broadcast %17 : f32 to vector<4x1xf32>
    %340 = vector.broadcast %66 : f32 to vector<4x1xf32>
    %341 = arith.select %104, %339, %340 : vector<4x1xi1>, vector<4x1xf32>
    %342 = arith.andi %122, %177 : vector<1x256xi1>
    %343 = vector.broadcast %341 : vector<4x1xf32> to vector<4x256xf32>
    %344 = arith.mulf %338, %343 : vector<4x256xf32>
    %cst_39 = arith.constant 0.000000e+00 : f32
    %345 = vector.shape_cast %342 : vector<1x256xi1> to vector<1x256xi1>
    %346 = vector.broadcast %345 : vector<1x256xi1> to vector<4x256xi1>
    %347 = vector.broadcast %cst_39 : f32 to vector<4x256xf32>
    %348 = arith.select %346, %344, %347 : vector<4x256xi1>, vector<4x256xf32>
    %349 = arith.addf %301, %348 : vector<4x256xf32>
    %c19_i32 = arith.constant 19 : i32
    %350 = tpu.dynamic_rotate %3 by %c19_i32 dim 1 : vector<4x256xf32>, i32 -> vector<4x256xf32>
    %351 = vector.broadcast %18 : f32 to vector<4x1xf32>
    %352 = vector.broadcast %67 : f32 to vector<4x1xf32>
    %353 = arith.select %104, %351, %352 : vector<4x1xi1>, vector<4x1xf32>
    %354 = arith.andi %132, %117 : vector<1x256xi1>
    %355 = vector.broadcast %353 : vector<4x1xf32> to vector<4x256xf32>
    %356 = arith.mulf %350, %355 : vector<4x256xf32>
    %cst_40 = arith.constant 0.000000e+00 : f32
    %357 = vector.shape_cast %354 : vector<1x256xi1> to vector<1x256xi1>
    %358 = vector.broadcast %357 : vector<1x256xi1> to vector<4x256xi1>
    %359 = vector.broadcast %cst_40 : f32 to vector<4x256xf32>
    %360 = arith.select %358, %356, %359 : vector<4x256xi1>, vector<4x256xf32>
    %361 = arith.addf %313, %360 : vector<4x256xf32>
    %c18_i32 = arith.constant 18 : i32
    %362 = tpu.dynamic_rotate %3 by %c18_i32 dim 1 : vector<4x256xf32>, i32 -> vector<4x256xf32>
    %363 = vector.broadcast %19 : f32 to vector<4x1xf32>
    %364 = vector.broadcast %68 : f32 to vector<4x1xf32>
    %365 = arith.select %104, %363, %364 : vector<4x1xi1>, vector<4x1xf32>
    %366 = arith.andi %132, %127 : vector<1x256xi1>
    %367 = vector.broadcast %365 : vector<4x1xf32> to vector<4x256xf32>
    %368 = arith.mulf %362, %367 : vector<4x256xf32>
    %cst_41 = arith.constant 0.000000e+00 : f32
    %369 = vector.shape_cast %366 : vector<1x256xi1> to vector<1x256xi1>
    %370 = vector.broadcast %369 : vector<1x256xi1> to vector<4x256xi1>
    %371 = vector.broadcast %cst_41 : f32 to vector<4x256xf32>
    %372 = arith.select %370, %368, %371 : vector<4x256xi1>, vector<4x256xf32>
    %373 = arith.addf %325, %372 : vector<4x256xf32>
    %c17_i32 = arith.constant 17 : i32
    %374 = tpu.dynamic_rotate %3 by %c17_i32 dim 1 : vector<4x256xf32>, i32 -> vector<4x256xf32>
    %375 = vector.broadcast %20 : f32 to vector<4x1xf32>
    %376 = vector.broadcast %69 : f32 to vector<4x1xf32>
    %377 = arith.select %104, %375, %376 : vector<4x1xi1>, vector<4x1xf32>
    %378 = arith.andi %132, %137 : vector<1x256xi1>
    %379 = vector.broadcast %377 : vector<4x1xf32> to vector<4x256xf32>
    %380 = arith.mulf %374, %379 : vector<4x256xf32>
    %cst_42 = arith.constant 0.000000e+00 : f32
    %381 = vector.shape_cast %378 : vector<1x256xi1> to vector<1x256xi1>
    %382 = vector.broadcast %381 : vector<1x256xi1> to vector<4x256xi1>
    %383 = vector.broadcast %cst_42 : f32 to vector<4x256xf32>
    %384 = arith.select %382, %380, %383 : vector<4x256xi1>, vector<4x256xf32>
    %385 = arith.addf %337, %384 : vector<4x256xf32>
    %c16_i32_43 = arith.constant 16 : i32
    %386 = tpu.dynamic_rotate %3 by %c16_i32_43 dim 1 : vector<4x256xf32>, i32 -> vector<4x256xf32>
    %387 = vector.broadcast %21 : f32 to vector<4x1xf32>
    %388 = vector.broadcast %70 : f32 to vector<4x1xf32>
    %389 = arith.select %104, %387, %388 : vector<4x1xi1>, vector<4x1xf32>
    %390 = arith.andi %132, %147 : vector<1x256xi1>
    %391 = vector.broadcast %389 : vector<4x1xf32> to vector<4x256xf32>
    %392 = arith.mulf %386, %391 : vector<4x256xf32>
    %cst_44 = arith.constant 0.000000e+00 : f32
    %393 = vector.shape_cast %390 : vector<1x256xi1> to vector<1x256xi1>
    %394 = vector.broadcast %393 : vector<1x256xi1> to vector<4x256xi1>
    %395 = vector.broadcast %cst_44 : f32 to vector<4x256xf32>
    %396 = arith.select %394, %392, %395 : vector<4x256xi1>, vector<4x256xf32>
    %397 = arith.addf %349, %396 : vector<4x256xf32>
    %c15_i32_45 = arith.constant 15 : i32
    %398 = tpu.dynamic_rotate %3 by %c15_i32_45 dim 1 : vector<4x256xf32>, i32 -> vector<4x256xf32>
    %399 = vector.broadcast %22 : f32 to vector<4x1xf32>
    %400 = vector.broadcast %71 : f32 to vector<4x1xf32>
    %401 = arith.select %104, %399, %400 : vector<4x1xi1>, vector<4x1xf32>
    %402 = arith.andi %132, %157 : vector<1x256xi1>
    %403 = vector.broadcast %401 : vector<4x1xf32> to vector<4x256xf32>
    %404 = arith.mulf %398, %403 : vector<4x256xf32>
    %cst_46 = arith.constant 0.000000e+00 : f32
    %405 = vector.shape_cast %402 : vector<1x256xi1> to vector<1x256xi1>
    %406 = vector.broadcast %405 : vector<1x256xi1> to vector<4x256xi1>
    %407 = vector.broadcast %cst_46 : f32 to vector<4x256xf32>
    %408 = arith.select %406, %404, %407 : vector<4x256xi1>, vector<4x256xf32>
    %409 = arith.addf %361, %408 : vector<4x256xf32>
    %c14_i32_47 = arith.constant 14 : i32
    %410 = tpu.dynamic_rotate %3 by %c14_i32_47 dim 1 : vector<4x256xf32>, i32 -> vector<4x256xf32>
    %411 = vector.broadcast %23 : f32 to vector<4x1xf32>
    %412 = vector.broadcast %72 : f32 to vector<4x1xf32>
    %413 = arith.select %104, %411, %412 : vector<4x1xi1>, vector<4x1xf32>
    %414 = arith.andi %132, %167 : vector<1x256xi1>
    %415 = vector.broadcast %413 : vector<4x1xf32> to vector<4x256xf32>
    %416 = arith.mulf %410, %415 : vector<4x256xf32>
    %cst_48 = arith.constant 0.000000e+00 : f32
    %417 = vector.shape_cast %414 : vector<1x256xi1> to vector<1x256xi1>
    %418 = vector.broadcast %417 : vector<1x256xi1> to vector<4x256xi1>
    %419 = vector.broadcast %cst_48 : f32 to vector<4x256xf32>
    %420 = arith.select %418, %416, %419 : vector<4x256xi1>, vector<4x256xf32>
    %421 = arith.addf %373, %420 : vector<4x256xf32>
    %c13_i32_49 = arith.constant 13 : i32
    %422 = tpu.dynamic_rotate %3 by %c13_i32_49 dim 1 : vector<4x256xf32>, i32 -> vector<4x256xf32>
    %423 = vector.broadcast %24 : f32 to vector<4x1xf32>
    %424 = vector.broadcast %73 : f32 to vector<4x1xf32>
    %425 = arith.select %104, %423, %424 : vector<4x1xi1>, vector<4x1xf32>
    %426 = arith.andi %132, %177 : vector<1x256xi1>
    %427 = vector.broadcast %425 : vector<4x1xf32> to vector<4x256xf32>
    %428 = arith.mulf %422, %427 : vector<4x256xf32>
    %cst_50 = arith.constant 0.000000e+00 : f32
    %429 = vector.shape_cast %426 : vector<1x256xi1> to vector<1x256xi1>
    %430 = vector.broadcast %429 : vector<1x256xi1> to vector<4x256xi1>
    %431 = vector.broadcast %cst_50 : f32 to vector<4x256xf32>
    %432 = arith.select %430, %428, %431 : vector<4x256xi1>, vector<4x256xf32>
    %433 = arith.addf %385, %432 : vector<4x256xf32>
    %c3_i32_51 = arith.constant 3 : i32
    %434 = tpu.dynamic_rotate %3 by %c3_i32_51 dim 1 : vector<4x256xf32>, i32 -> vector<4x256xf32>
    %435 = vector.broadcast %25 : f32 to vector<4x1xf32>
    %436 = vector.broadcast %74 : f32 to vector<4x1xf32>
    %437 = arith.select %104, %435, %436 : vector<4x1xi1>, vector<4x1xf32>
    %438 = arith.andi %142, %117 : vector<1x256xi1>
    %439 = vector.broadcast %437 : vector<4x1xf32> to vector<4x256xf32>
    %440 = arith.mulf %434, %439 : vector<4x256xf32>
    %cst_52 = arith.constant 0.000000e+00 : f32
    %441 = vector.shape_cast %438 : vector<1x256xi1> to vector<1x256xi1>
    %442 = vector.broadcast %441 : vector<1x256xi1> to vector<4x256xi1>
    %443 = vector.broadcast %cst_52 : f32 to vector<4x256xf32>
    %444 = arith.select %442, %440, %443 : vector<4x256xi1>, vector<4x256xf32>
    %445 = arith.addf %397, %444 : vector<4x256xf32>
    %c2_i32_53 = arith.constant 2 : i32
    %446 = tpu.dynamic_rotate %3 by %c2_i32_53 dim 1 : vector<4x256xf32>, i32 -> vector<4x256xf32>
    %447 = vector.broadcast %26 : f32 to vector<4x1xf32>
    %448 = vector.broadcast %75 : f32 to vector<4x1xf32>
    %449 = arith.select %104, %447, %448 : vector<4x1xi1>, vector<4x1xf32>
    %450 = arith.andi %142, %127 : vector<1x256xi1>
    %451 = vector.broadcast %449 : vector<4x1xf32> to vector<4x256xf32>
    %452 = arith.mulf %446, %451 : vector<4x256xf32>
    %cst_54 = arith.constant 0.000000e+00 : f32
    %453 = vector.shape_cast %450 : vector<1x256xi1> to vector<1x256xi1>
    %454 = vector.broadcast %453 : vector<1x256xi1> to vector<4x256xi1>
    %455 = vector.broadcast %cst_54 : f32 to vector<4x256xf32>
    %456 = arith.select %454, %452, %455 : vector<4x256xi1>, vector<4x256xf32>
    %457 = arith.addf %409, %456 : vector<4x256xf32>
    %c1_i32_55 = arith.constant 1 : i32
    %458 = tpu.dynamic_rotate %3 by %c1_i32_55 dim 1 : vector<4x256xf32>, i32 -> vector<4x256xf32>
    %459 = vector.broadcast %27 : f32 to vector<4x1xf32>
    %460 = vector.broadcast %76 : f32 to vector<4x1xf32>
    %461 = arith.select %104, %459, %460 : vector<4x1xi1>, vector<4x1xf32>
    %462 = arith.andi %142, %137 : vector<1x256xi1>
    %463 = vector.broadcast %461 : vector<4x1xf32> to vector<4x256xf32>
    %464 = arith.mulf %458, %463 : vector<4x256xf32>
    %cst_56 = arith.constant 0.000000e+00 : f32
    %465 = vector.shape_cast %462 : vector<1x256xi1> to vector<1x256xi1>
    %466 = vector.broadcast %465 : vector<1x256xi1> to vector<4x256xi1>
    %467 = vector.broadcast %cst_56 : f32 to vector<4x256xf32>
    %468 = arith.select %466, %464, %467 : vector<4x256xi1>, vector<4x256xf32>
    %469 = arith.addf %421, %468 : vector<4x256xf32>
    %470 = vector.broadcast %28 : f32 to vector<4x1xf32>
    %471 = vector.broadcast %77 : f32 to vector<4x1xf32>
    %472 = arith.select %104, %470, %471 : vector<4x1xi1>, vector<4x1xf32>
    %473 = arith.andi %142, %147 : vector<1x256xi1>
    %474 = vector.broadcast %472 : vector<4x1xf32> to vector<4x256xf32>
    %475 = arith.mulf %3, %474 : vector<4x256xf32>
    %cst_57 = arith.constant 0.000000e+00 : f32
    %476 = vector.shape_cast %473 : vector<1x256xi1> to vector<1x256xi1>
    %477 = vector.broadcast %476 : vector<1x256xi1> to vector<4x256xi1>
    %478 = vector.broadcast %cst_57 : f32 to vector<4x256xf32>
    %479 = arith.select %477, %475, %478 : vector<4x256xi1>, vector<4x256xf32>
    %480 = arith.addf %433, %479 : vector<4x256xf32>
    %c255_i32 = arith.constant 255 : i32
    %481 = tpu.dynamic_rotate %3 by %c255_i32 dim 1 : vector<4x256xf32>, i32 -> vector<4x256xf32>
    %482 = vector.broadcast %29 : f32 to vector<4x1xf32>
    %483 = vector.broadcast %78 : f32 to vector<4x1xf32>
    %484 = arith.select %104, %482, %483 : vector<4x1xi1>, vector<4x1xf32>
    %485 = arith.andi %142, %157 : vector<1x256xi1>
    %486 = vector.broadcast %484 : vector<4x1xf32> to vector<4x256xf32>
    %487 = arith.mulf %481, %486 : vector<4x256xf32>
    %cst_58 = arith.constant 0.000000e+00 : f32
    %488 = vector.shape_cast %485 : vector<1x256xi1> to vector<1x256xi1>
    %489 = vector.broadcast %488 : vector<1x256xi1> to vector<4x256xi1>
    %490 = vector.broadcast %cst_58 : f32 to vector<4x256xf32>
    %491 = arith.select %489, %487, %490 : vector<4x256xi1>, vector<4x256xf32>
    %492 = arith.addf %445, %491 : vector<4x256xf32>
    %c254_i32 = arith.constant 254 : i32
    %493 = tpu.dynamic_rotate %3 by %c254_i32 dim 1 : vector<4x256xf32>, i32 -> vector<4x256xf32>
    %494 = vector.broadcast %30 : f32 to vector<4x1xf32>
    %495 = vector.broadcast %79 : f32 to vector<4x1xf32>
    %496 = arith.select %104, %494, %495 : vector<4x1xi1>, vector<4x1xf32>
    %497 = arith.andi %142, %167 : vector<1x256xi1>
    %498 = vector.broadcast %496 : vector<4x1xf32> to vector<4x256xf32>
    %499 = arith.mulf %493, %498 : vector<4x256xf32>
    %cst_59 = arith.constant 0.000000e+00 : f32
    %500 = vector.shape_cast %497 : vector<1x256xi1> to vector<1x256xi1>
    %501 = vector.broadcast %500 : vector<1x256xi1> to vector<4x256xi1>
    %502 = vector.broadcast %cst_59 : f32 to vector<4x256xf32>
    %503 = arith.select %501, %499, %502 : vector<4x256xi1>, vector<4x256xf32>
    %504 = arith.addf %457, %503 : vector<4x256xf32>
    %c253_i32 = arith.constant 253 : i32
    %505 = tpu.dynamic_rotate %3 by %c253_i32 dim 1 : vector<4x256xf32>, i32 -> vector<4x256xf32>
    %506 = vector.broadcast %31 : f32 to vector<4x1xf32>
    %507 = vector.broadcast %80 : f32 to vector<4x1xf32>
    %508 = arith.select %104, %506, %507 : vector<4x1xi1>, vector<4x1xf32>
    %509 = arith.andi %142, %177 : vector<1x256xi1>
    %510 = vector.broadcast %508 : vector<4x1xf32> to vector<4x256xf32>
    %511 = arith.mulf %505, %510 : vector<4x256xf32>
    %cst_60 = arith.constant 0.000000e+00 : f32
    %512 = vector.shape_cast %509 : vector<1x256xi1> to vector<1x256xi1>
    %513 = vector.broadcast %512 : vector<1x256xi1> to vector<4x256xi1>
    %514 = vector.broadcast %cst_60 : f32 to vector<4x256xf32>
    %515 = arith.select %513, %511, %514 : vector<4x256xi1>, vector<4x256xf32>
    %516 = arith.addf %469, %515 : vector<4x256xf32>
    %c243_i32 = arith.constant 243 : i32
    %517 = tpu.dynamic_rotate %3 by %c243_i32 dim 1 : vector<4x256xf32>, i32 -> vector<4x256xf32>
    %518 = vector.broadcast %32 : f32 to vector<4x1xf32>
    %519 = vector.broadcast %81 : f32 to vector<4x1xf32>
    %520 = arith.select %104, %518, %519 : vector<4x1xi1>, vector<4x1xf32>
    %521 = arith.andi %152, %117 : vector<1x256xi1>
    %522 = vector.broadcast %520 : vector<4x1xf32> to vector<4x256xf32>
    %523 = arith.mulf %517, %522 : vector<4x256xf32>
    %cst_61 = arith.constant 0.000000e+00 : f32
    %524 = vector.shape_cast %521 : vector<1x256xi1> to vector<1x256xi1>
    %525 = vector.broadcast %524 : vector<1x256xi1> to vector<4x256xi1>
    %526 = vector.broadcast %cst_61 : f32 to vector<4x256xf32>
    %527 = arith.select %525, %523, %526 : vector<4x256xi1>, vector<4x256xf32>
    %528 = arith.addf %480, %527 : vector<4x256xf32>
    %c242_i32 = arith.constant 242 : i32
    %529 = tpu.dynamic_rotate %3 by %c242_i32 dim 1 : vector<4x256xf32>, i32 -> vector<4x256xf32>
    %530 = vector.broadcast %33 : f32 to vector<4x1xf32>
    %531 = vector.broadcast %82 : f32 to vector<4x1xf32>
    %532 = arith.select %104, %530, %531 : vector<4x1xi1>, vector<4x1xf32>
    %533 = arith.andi %152, %127 : vector<1x256xi1>
    %534 = vector.broadcast %532 : vector<4x1xf32> to vector<4x256xf32>
    %535 = arith.mulf %529, %534 : vector<4x256xf32>
    %cst_62 = arith.constant 0.000000e+00 : f32
    %536 = vector.shape_cast %533 : vector<1x256xi1> to vector<1x256xi1>
    %537 = vector.broadcast %536 : vector<1x256xi1> to vector<4x256xi1>
    %538 = vector.broadcast %cst_62 : f32 to vector<4x256xf32>
    %539 = arith.select %537, %535, %538 : vector<4x256xi1>, vector<4x256xf32>
    %540 = arith.addf %492, %539 : vector<4x256xf32>
    %c241_i32 = arith.constant 241 : i32
    %541 = tpu.dynamic_rotate %3 by %c241_i32 dim 1 : vector<4x256xf32>, i32 -> vector<4x256xf32>
    %542 = vector.broadcast %34 : f32 to vector<4x1xf32>
    %543 = vector.broadcast %83 : f32 to vector<4x1xf32>
    %544 = arith.select %104, %542, %543 : vector<4x1xi1>, vector<4x1xf32>
    %545 = arith.andi %152, %137 : vector<1x256xi1>
    %546 = vector.broadcast %544 : vector<4x1xf32> to vector<4x256xf32>
    %547 = arith.mulf %541, %546 : vector<4x256xf32>
    %cst_63 = arith.constant 0.000000e+00 : f32
    %548 = vector.shape_cast %545 : vector<1x256xi1> to vector<1x256xi1>
    %549 = vector.broadcast %548 : vector<1x256xi1> to vector<4x256xi1>
    %550 = vector.broadcast %cst_63 : f32 to vector<4x256xf32>
    %551 = arith.select %549, %547, %550 : vector<4x256xi1>, vector<4x256xf32>
    %552 = arith.addf %504, %551 : vector<4x256xf32>
    %c240_i32_64 = arith.constant 240 : i32
    %553 = tpu.dynamic_rotate %3 by %c240_i32_64 dim 1 : vector<4x256xf32>, i32 -> vector<4x256xf32>
    %554 = vector.broadcast %35 : f32 to vector<4x1xf32>
    %555 = vector.broadcast %84 : f32 to vector<4x1xf32>
    %556 = arith.select %104, %554, %555 : vector<4x1xi1>, vector<4x1xf32>
    %557 = arith.andi %152, %147 : vector<1x256xi1>
    %558 = vector.broadcast %556 : vector<4x1xf32> to vector<4x256xf32>
    %559 = arith.mulf %553, %558 : vector<4x256xf32>
    %cst_65 = arith.constant 0.000000e+00 : f32
    %560 = vector.shape_cast %557 : vector<1x256xi1> to vector<1x256xi1>
    %561 = vector.broadcast %560 : vector<1x256xi1> to vector<4x256xi1>
    %562 = vector.broadcast %cst_65 : f32 to vector<4x256xf32>
    %563 = arith.select %561, %559, %562 : vector<4x256xi1>, vector<4x256xf32>
    %564 = arith.addf %516, %563 : vector<4x256xf32>
    %c239_i32 = arith.constant 239 : i32
    %565 = tpu.dynamic_rotate %3 by %c239_i32 dim 1 : vector<4x256xf32>, i32 -> vector<4x256xf32>
    %566 = vector.broadcast %36 : f32 to vector<4x1xf32>
    %567 = vector.broadcast %85 : f32 to vector<4x1xf32>
    %568 = arith.select %104, %566, %567 : vector<4x1xi1>, vector<4x1xf32>
    %569 = arith.andi %152, %157 : vector<1x256xi1>
    %570 = vector.broadcast %568 : vector<4x1xf32> to vector<4x256xf32>
    %571 = arith.mulf %565, %570 : vector<4x256xf32>
    %cst_66 = arith.constant 0.000000e+00 : f32
    %572 = vector.shape_cast %569 : vector<1x256xi1> to vector<1x256xi1>
    %573 = vector.broadcast %572 : vector<1x256xi1> to vector<4x256xi1>
    %574 = vector.broadcast %cst_66 : f32 to vector<4x256xf32>
    %575 = arith.select %573, %571, %574 : vector<4x256xi1>, vector<4x256xf32>
    %576 = arith.addf %528, %575 : vector<4x256xf32>
    %c238_i32 = arith.constant 238 : i32
    %577 = tpu.dynamic_rotate %3 by %c238_i32 dim 1 : vector<4x256xf32>, i32 -> vector<4x256xf32>
    %578 = vector.broadcast %37 : f32 to vector<4x1xf32>
    %579 = vector.broadcast %86 : f32 to vector<4x1xf32>
    %580 = arith.select %104, %578, %579 : vector<4x1xi1>, vector<4x1xf32>
    %581 = arith.andi %152, %167 : vector<1x256xi1>
    %582 = vector.broadcast %580 : vector<4x1xf32> to vector<4x256xf32>
    %583 = arith.mulf %577, %582 : vector<4x256xf32>
    %cst_67 = arith.constant 0.000000e+00 : f32
    %584 = vector.shape_cast %581 : vector<1x256xi1> to vector<1x256xi1>
    %585 = vector.broadcast %584 : vector<1x256xi1> to vector<4x256xi1>
    %586 = vector.broadcast %cst_67 : f32 to vector<4x256xf32>
    %587 = arith.select %585, %583, %586 : vector<4x256xi1>, vector<4x256xf32>
    %588 = arith.addf %540, %587 : vector<4x256xf32>
    %c237_i32 = arith.constant 237 : i32
    %589 = tpu.dynamic_rotate %3 by %c237_i32 dim 1 : vector<4x256xf32>, i32 -> vector<4x256xf32>
    %590 = vector.broadcast %38 : f32 to vector<4x1xf32>
    %591 = vector.broadcast %87 : f32 to vector<4x1xf32>
    %592 = arith.select %104, %590, %591 : vector<4x1xi1>, vector<4x1xf32>
    %593 = arith.andi %152, %177 : vector<1x256xi1>
    %594 = vector.broadcast %592 : vector<4x1xf32> to vector<4x256xf32>
    %595 = arith.mulf %589, %594 : vector<4x256xf32>
    %cst_68 = arith.constant 0.000000e+00 : f32
    %596 = vector.shape_cast %593 : vector<1x256xi1> to vector<1x256xi1>
    %597 = vector.broadcast %596 : vector<1x256xi1> to vector<4x256xi1>
    %598 = vector.broadcast %cst_68 : f32 to vector<4x256xf32>
    %599 = arith.select %597, %595, %598 : vector<4x256xi1>, vector<4x256xf32>
    %600 = arith.addf %552, %599 : vector<4x256xf32>
    %c227_i32 = arith.constant 227 : i32
    %601 = tpu.dynamic_rotate %3 by %c227_i32 dim 1 : vector<4x256xf32>, i32 -> vector<4x256xf32>
    %602 = vector.broadcast %39 : f32 to vector<4x1xf32>
    %603 = vector.broadcast %88 : f32 to vector<4x1xf32>
    %604 = arith.select %104, %602, %603 : vector<4x1xi1>, vector<4x1xf32>
    %605 = arith.andi %162, %117 : vector<1x256xi1>
    %606 = vector.broadcast %604 : vector<4x1xf32> to vector<4x256xf32>
    %607 = arith.mulf %601, %606 : vector<4x256xf32>
    %cst_69 = arith.constant 0.000000e+00 : f32
    %608 = vector.shape_cast %605 : vector<1x256xi1> to vector<1x256xi1>
    %609 = vector.broadcast %608 : vector<1x256xi1> to vector<4x256xi1>
    %610 = vector.broadcast %cst_69 : f32 to vector<4x256xf32>
    %611 = arith.select %609, %607, %610 : vector<4x256xi1>, vector<4x256xf32>
    %612 = arith.addf %564, %611 : vector<4x256xf32>
    %c226_i32 = arith.constant 226 : i32
    %613 = tpu.dynamic_rotate %3 by %c226_i32 dim 1 : vector<4x256xf32>, i32 -> vector<4x256xf32>
    %614 = vector.broadcast %40 : f32 to vector<4x1xf32>
    %615 = vector.broadcast %89 : f32 to vector<4x1xf32>
    %616 = arith.select %104, %614, %615 : vector<4x1xi1>, vector<4x1xf32>
    %617 = arith.andi %162, %127 : vector<1x256xi1>
    %618 = vector.broadcast %616 : vector<4x1xf32> to vector<4x256xf32>
    %619 = arith.mulf %613, %618 : vector<4x256xf32>
    %cst_70 = arith.constant 0.000000e+00 : f32
    %620 = vector.shape_cast %617 : vector<1x256xi1> to vector<1x256xi1>
    %621 = vector.broadcast %620 : vector<1x256xi1> to vector<4x256xi1>
    %622 = vector.broadcast %cst_70 : f32 to vector<4x256xf32>
    %623 = arith.select %621, %619, %622 : vector<4x256xi1>, vector<4x256xf32>
    %624 = arith.addf %576, %623 : vector<4x256xf32>
    %c225_i32 = arith.constant 225 : i32
    %625 = tpu.dynamic_rotate %3 by %c225_i32 dim 1 : vector<4x256xf32>, i32 -> vector<4x256xf32>
    %626 = vector.broadcast %41 : f32 to vector<4x1xf32>
    %627 = vector.broadcast %90 : f32 to vector<4x1xf32>
    %628 = arith.select %104, %626, %627 : vector<4x1xi1>, vector<4x1xf32>
    %629 = arith.andi %162, %137 : vector<1x256xi1>
    %630 = vector.broadcast %628 : vector<4x1xf32> to vector<4x256xf32>
    %631 = arith.mulf %625, %630 : vector<4x256xf32>
    %cst_71 = arith.constant 0.000000e+00 : f32
    %632 = vector.shape_cast %629 : vector<1x256xi1> to vector<1x256xi1>
    %633 = vector.broadcast %632 : vector<1x256xi1> to vector<4x256xi1>
    %634 = vector.broadcast %cst_71 : f32 to vector<4x256xf32>
    %635 = arith.select %633, %631, %634 : vector<4x256xi1>, vector<4x256xf32>
    %636 = arith.addf %588, %635 : vector<4x256xf32>
    %c224_i32_72 = arith.constant 224 : i32
    %637 = tpu.dynamic_rotate %3 by %c224_i32_72 dim 1 : vector<4x256xf32>, i32 -> vector<4x256xf32>
    %638 = vector.broadcast %42 : f32 to vector<4x1xf32>
    %639 = vector.broadcast %91 : f32 to vector<4x1xf32>
    %640 = arith.select %104, %638, %639 : vector<4x1xi1>, vector<4x1xf32>
    %641 = arith.andi %162, %147 : vector<1x256xi1>
    %642 = vector.broadcast %640 : vector<4x1xf32> to vector<4x256xf32>
    %643 = arith.mulf %637, %642 : vector<4x256xf32>
    %cst_73 = arith.constant 0.000000e+00 : f32
    %644 = vector.shape_cast %641 : vector<1x256xi1> to vector<1x256xi1>
    %645 = vector.broadcast %644 : vector<1x256xi1> to vector<4x256xi1>
    %646 = vector.broadcast %cst_73 : f32 to vector<4x256xf32>
    %647 = arith.select %645, %643, %646 : vector<4x256xi1>, vector<4x256xf32>
    %648 = arith.addf %600, %647 : vector<4x256xf32>
    %c223_i32 = arith.constant 223 : i32
    %649 = tpu.dynamic_rotate %3 by %c223_i32 dim 1 : vector<4x256xf32>, i32 -> vector<4x256xf32>
    %650 = vector.broadcast %43 : f32 to vector<4x1xf32>
    %651 = vector.broadcast %92 : f32 to vector<4x1xf32>
    %652 = arith.select %104, %650, %651 : vector<4x1xi1>, vector<4x1xf32>
    %653 = arith.andi %162, %157 : vector<1x256xi1>
    %654 = vector.broadcast %652 : vector<4x1xf32> to vector<4x256xf32>
    %655 = arith.mulf %649, %654 : vector<4x256xf32>
    %cst_74 = arith.constant 0.000000e+00 : f32
    %656 = vector.shape_cast %653 : vector<1x256xi1> to vector<1x256xi1>
    %657 = vector.broadcast %656 : vector<1x256xi1> to vector<4x256xi1>
    %658 = vector.broadcast %cst_74 : f32 to vector<4x256xf32>
    %659 = arith.select %657, %655, %658 : vector<4x256xi1>, vector<4x256xf32>
    %660 = arith.addf %612, %659 : vector<4x256xf32>
    %c222_i32 = arith.constant 222 : i32
    %661 = tpu.dynamic_rotate %3 by %c222_i32 dim 1 : vector<4x256xf32>, i32 -> vector<4x256xf32>
    %662 = vector.broadcast %44 : f32 to vector<4x1xf32>
    %663 = vector.broadcast %93 : f32 to vector<4x1xf32>
    %664 = arith.select %104, %662, %663 : vector<4x1xi1>, vector<4x1xf32>
    %665 = arith.andi %162, %167 : vector<1x256xi1>
    %666 = vector.broadcast %664 : vector<4x1xf32> to vector<4x256xf32>
    %667 = arith.mulf %661, %666 : vector<4x256xf32>
    %cst_75 = arith.constant 0.000000e+00 : f32
    %668 = vector.shape_cast %665 : vector<1x256xi1> to vector<1x256xi1>
    %669 = vector.broadcast %668 : vector<1x256xi1> to vector<4x256xi1>
    %670 = vector.broadcast %cst_75 : f32 to vector<4x256xf32>
    %671 = arith.select %669, %667, %670 : vector<4x256xi1>, vector<4x256xf32>
    %672 = arith.addf %624, %671 : vector<4x256xf32>
    %c221_i32 = arith.constant 221 : i32
    %673 = tpu.dynamic_rotate %3 by %c221_i32 dim 1 : vector<4x256xf32>, i32 -> vector<4x256xf32>
    %674 = vector.broadcast %45 : f32 to vector<4x1xf32>
    %675 = vector.broadcast %94 : f32 to vector<4x1xf32>
    %676 = arith.select %104, %674, %675 : vector<4x1xi1>, vector<4x1xf32>
    %677 = arith.andi %162, %177 : vector<1x256xi1>
    %678 = vector.broadcast %676 : vector<4x1xf32> to vector<4x256xf32>
    %679 = arith.mulf %673, %678 : vector<4x256xf32>
    %cst_76 = arith.constant 0.000000e+00 : f32
    %680 = vector.shape_cast %677 : vector<1x256xi1> to vector<1x256xi1>
    %681 = vector.broadcast %680 : vector<1x256xi1> to vector<4x256xi1>
    %682 = vector.broadcast %cst_76 : f32 to vector<4x256xf32>
    %683 = arith.select %681, %679, %682 : vector<4x256xi1>, vector<4x256xf32>
    %684 = arith.addf %636, %683 : vector<4x256xf32>
    %c211_i32 = arith.constant 211 : i32
    %685 = tpu.dynamic_rotate %3 by %c211_i32 dim 1 : vector<4x256xf32>, i32 -> vector<4x256xf32>
    %686 = vector.broadcast %46 : f32 to vector<4x1xf32>
    %687 = vector.broadcast %95 : f32 to vector<4x1xf32>
    %688 = arith.select %104, %686, %687 : vector<4x1xi1>, vector<4x1xf32>
    %689 = arith.andi %172, %117 : vector<1x256xi1>
    %690 = vector.broadcast %688 : vector<4x1xf32> to vector<4x256xf32>
    %691 = arith.mulf %685, %690 : vector<4x256xf32>
    %cst_77 = arith.constant 0.000000e+00 : f32
    %692 = vector.shape_cast %689 : vector<1x256xi1> to vector<1x256xi1>
    %693 = vector.broadcast %692 : vector<1x256xi1> to vector<4x256xi1>
    %694 = vector.broadcast %cst_77 : f32 to vector<4x256xf32>
    %695 = arith.select %693, %691, %694 : vector<4x256xi1>, vector<4x256xf32>
    %696 = arith.addf %648, %695 : vector<4x256xf32>
    %c210_i32 = arith.constant 210 : i32
    %697 = tpu.dynamic_rotate %3 by %c210_i32 dim 1 : vector<4x256xf32>, i32 -> vector<4x256xf32>
    %698 = vector.broadcast %47 : f32 to vector<4x1xf32>
    %699 = vector.broadcast %96 : f32 to vector<4x1xf32>
    %700 = arith.select %104, %698, %699 : vector<4x1xi1>, vector<4x1xf32>
    %701 = arith.andi %172, %127 : vector<1x256xi1>
    %702 = vector.broadcast %700 : vector<4x1xf32> to vector<4x256xf32>
    %703 = arith.mulf %697, %702 : vector<4x256xf32>
    %cst_78 = arith.constant 0.000000e+00 : f32
    %704 = vector.shape_cast %701 : vector<1x256xi1> to vector<1x256xi1>
    %705 = vector.broadcast %704 : vector<1x256xi1> to vector<4x256xi1>
    %706 = vector.broadcast %cst_78 : f32 to vector<4x256xf32>
    %707 = arith.select %705, %703, %706 : vector<4x256xi1>, vector<4x256xf32>
    %708 = arith.addf %660, %707 : vector<4x256xf32>
    %c209_i32 = arith.constant 209 : i32
    %709 = tpu.dynamic_rotate %3 by %c209_i32 dim 1 : vector<4x256xf32>, i32 -> vector<4x256xf32>
    %710 = vector.broadcast %48 : f32 to vector<4x1xf32>
    %711 = vector.broadcast %97 : f32 to vector<4x1xf32>
    %712 = arith.select %104, %710, %711 : vector<4x1xi1>, vector<4x1xf32>
    %713 = arith.andi %172, %137 : vector<1x256xi1>
    %714 = vector.broadcast %712 : vector<4x1xf32> to vector<4x256xf32>
    %715 = arith.mulf %709, %714 : vector<4x256xf32>
    %cst_79 = arith.constant 0.000000e+00 : f32
    %716 = vector.shape_cast %713 : vector<1x256xi1> to vector<1x256xi1>
    %717 = vector.broadcast %716 : vector<1x256xi1> to vector<4x256xi1>
    %718 = vector.broadcast %cst_79 : f32 to vector<4x256xf32>
    %719 = arith.select %717, %715, %718 : vector<4x256xi1>, vector<4x256xf32>
    %720 = arith.addf %672, %719 : vector<4x256xf32>
    %c208_i32_80 = arith.constant 208 : i32
    %721 = tpu.dynamic_rotate %3 by %c208_i32_80 dim 1 : vector<4x256xf32>, i32 -> vector<4x256xf32>
    %722 = vector.broadcast %49 : f32 to vector<4x1xf32>
    %723 = vector.broadcast %98 : f32 to vector<4x1xf32>
    %724 = arith.select %104, %722, %723 : vector<4x1xi1>, vector<4x1xf32>
    %725 = arith.andi %172, %147 : vector<1x256xi1>
    %726 = vector.broadcast %724 : vector<4x1xf32> to vector<4x256xf32>
    %727 = arith.mulf %721, %726 : vector<4x256xf32>
    %cst_81 = arith.constant 0.000000e+00 : f32
    %728 = vector.shape_cast %725 : vector<1x256xi1> to vector<1x256xi1>
    %729 = vector.broadcast %728 : vector<1x256xi1> to vector<4x256xi1>
    %730 = vector.broadcast %cst_81 : f32 to vector<4x256xf32>
    %731 = arith.select %729, %727, %730 : vector<4x256xi1>, vector<4x256xf32>
    %732 = arith.addf %684, %731 : vector<4x256xf32>
    %c207_i32 = arith.constant 207 : i32
    %733 = tpu.dynamic_rotate %3 by %c207_i32 dim 1 : vector<4x256xf32>, i32 -> vector<4x256xf32>
    %734 = vector.broadcast %50 : f32 to vector<4x1xf32>
    %735 = vector.broadcast %99 : f32 to vector<4x1xf32>
    %736 = arith.select %104, %734, %735 : vector<4x1xi1>, vector<4x1xf32>
    %737 = arith.andi %172, %157 : vector<1x256xi1>
    %738 = vector.broadcast %736 : vector<4x1xf32> to vector<4x256xf32>
    %739 = arith.mulf %733, %738 : vector<4x256xf32>
    %cst_82 = arith.constant 0.000000e+00 : f32
    %740 = vector.shape_cast %737 : vector<1x256xi1> to vector<1x256xi1>
    %741 = vector.broadcast %740 : vector<1x256xi1> to vector<4x256xi1>
    %742 = vector.broadcast %cst_82 : f32 to vector<4x256xf32>
    %743 = arith.select %741, %739, %742 : vector<4x256xi1>, vector<4x256xf32>
    %744 = arith.addf %696, %743 : vector<4x256xf32>
    %c206_i32 = arith.constant 206 : i32
    %745 = tpu.dynamic_rotate %3 by %c206_i32 dim 1 : vector<4x256xf32>, i32 -> vector<4x256xf32>
    %746 = vector.broadcast %51 : f32 to vector<4x1xf32>
    %747 = vector.broadcast %100 : f32 to vector<4x1xf32>
    %748 = arith.select %104, %746, %747 : vector<4x1xi1>, vector<4x1xf32>
    %749 = arith.andi %172, %167 : vector<1x256xi1>
    %750 = vector.broadcast %748 : vector<4x1xf32> to vector<4x256xf32>
    %751 = arith.mulf %745, %750 : vector<4x256xf32>
    %cst_83 = arith.constant 0.000000e+00 : f32
    %752 = vector.shape_cast %749 : vector<1x256xi1> to vector<1x256xi1>
    %753 = vector.broadcast %752 : vector<1x256xi1> to vector<4x256xi1>
    %754 = vector.broadcast %cst_83 : f32 to vector<4x256xf32>
    %755 = arith.select %753, %751, %754 : vector<4x256xi1>, vector<4x256xf32>
    %756 = arith.addf %708, %755 : vector<4x256xf32>
    %c205_i32 = arith.constant 205 : i32
    %757 = tpu.dynamic_rotate %3 by %c205_i32 dim 1 : vector<4x256xf32>, i32 -> vector<4x256xf32>
    %758 = vector.broadcast %52 : f32 to vector<4x1xf32>
    %759 = vector.broadcast %101 : f32 to vector<4x1xf32>
    %760 = arith.select %104, %758, %759 : vector<4x1xi1>, vector<4x1xf32>
    %761 = arith.andi %172, %177 : vector<1x256xi1>
    %762 = vector.broadcast %760 : vector<4x1xf32> to vector<4x256xf32>
    %763 = arith.mulf %757, %762 : vector<4x256xf32>
    %cst_84 = arith.constant 0.000000e+00 : f32
    %764 = vector.shape_cast %761 : vector<1x256xi1> to vector<1x256xi1>
    %765 = vector.broadcast %764 : vector<1x256xi1> to vector<4x256xi1>
    %766 = vector.broadcast %cst_84 : f32 to vector<4x256xf32>
    %767 = arith.select %765, %763, %766 : vector<4x256xi1>, vector<4x256xf32>
    %768 = arith.addf %720, %767 : vector<4x256xf32>
    %769 = arith.addf %768, %732 : vector<4x256xf32>
    %770 = arith.addf %744, %756 : vector<4x256xf32>
    %771 = arith.addf %769, %770 : vector<4x256xf32>
    %772 = vector.extract_strided_slice %771 {offsets = [0, 0], sizes = [2, 256], strides = [1, 1]} : vector<4x256xf32> to vector<2x256xf32>
    %773 = vector.extract_strided_slice %771 {offsets = [2, 0], sizes = [2, 256], strides = [1, 1]} : vector<4x256xf32> to vector<2x256xf32>
    %774 = arith.addf %772, %773 : vector<2x256xf32>
    %775 = arith.negf %774 : vector<2x256xf32>
    %776 = math.exp %775 : vector<2x256xf32>
    %cst_85 = arith.constant 1.000000e+00 : f32
    %777 = vector.broadcast %cst_85 : f32 to vector<2x256xf32>
    %778 = arith.addf %777, %776 : vector<2x256xf32>
    %779 = arith.divf %777, %778 : vector<2x256xf32>
    %c0_86 = arith.constant 0 : index
    %c0_87 = arith.constant 0 : index
    %c0_88 = arith.constant 0 : index
    %780 = vector.load %arg2[%c0_86, %c0_87, %c0_88] : memref<2x4x256xf32, #tpu.memory_space<vmem>>, vector<2x4x256xf32>
    %781 = vector.shape_cast %779 : vector<2x256xf32> to vector<2x1x256xf32>
    %782 = vector.broadcast %781 : vector<2x1x256xf32> to vector<2x4x256xf32>
    %783 = arith.mulf %780, %782 : vector<2x4x256xf32>
    %c0_89 = arith.constant 0 : index
    %c0_90 = arith.constant 0 : index
    %c0_91 = arith.constant 0 : index
    %784 = vector.load %arg3[%c0_89, %c0_90, %c0_91] : memref<2x4x256xf32, #tpu.memory_space<vmem>>, vector<2x4x256xf32>
    tpu.vector_store %arg3[%c0_89, %c0_90, %c0_91], %783 {strides = array<i32>} : memref<2x4x256xf32, #tpu.memory_space<vmem>>, vector<2x4x256xf32>,
    return
  }
  func.func @transform_0(%arg0: i32) -> i32 {
    %c0_i32 = arith.constant 0 : i32
    %c0_i32_0 = arith.constant 0 : i32
    return %c0_i32 : i32
  }
  func.func @transform_1(%arg0: i32) -> (i32, i32, i32) {
    %c0_i32 = arith.constant 0 : i32
    %c0_i32_0 = arith.constant 0 : i32
    %c0_i32_1 = arith.constant 0 : i32
    return %arg0, %c0_i32, %c0_i32_0 : i32, i32, i32
  }
  func.func @transform_2(%arg0: i32) -> (i32, i32, i32) {
    %c0_i32 = arith.constant 0 : i32
    %c0_i32_0 = arith.constant 0 : i32
    %c0_i32_1 = arith.constant 0 : i32
    return %arg0, %c0_i32, %c0_i32_0 : i32, i32, i32
  }
}

</mosaic_0001>

<bundles_post_ra>
// kernel: tpu_custom_call.1
= control target key start
LH: loop header
LB: loop body
LE: loop exit
PB: predicated region body
PF: predicated region fallthrough
CT: control target
= control target key end

     0   :  { %7 = vsyncpa [#allocation5], 0  ;;  %s3277_s0 = inlined_call_operand.hbm [shape: f32[98], index: 0, kind: input, shape index: {}]   ;;  %s3278_s1 = inlined_call_operand.hbm [shape: f32[2,4,256], index: 1, kind: input, shape index: {}]   ;;  %s3279_s2 = inlined_call_operand.hbm [shape: f32[2,4,256], index: 2, kind: output, shape index: {}]  }
   0x1   :  { %8 = vsyncpa [#allocation3], 0 }
   0x2   :  { %9 = vsyncpa [#allocation4], 0  ;;  %s1618_s11 = scalar_lea.hbm %s3277_s0, 16 }
   0x3   :  { %p1619_p0 = scmp.ne.s32.totalorder %s3277_s0, %s1618_s11  ;;  %p1622_p1 = scmp.lt.u32.totalorder %s1618_s11, %s3277_s0 }
   0x5   :  { %p1624_p2 = pnand %p1622_p1, %p1619_p0 }
   0x7   :  { %1627 = shalt.err (!%p1624_p2)
}
   0x8   :  { %s1678_s16 = smov [#allocation2]   ;;  %s1679_s19 = smov [#allocation6]  }
   0x9   :  { %17 = dma.hbm_to_smem %s3277_s0, 16, %s1678_s16, [#allocation5]  }
   0xa   :  { %s23_s20 = sshll.u32 %s1679_s19, 4  ;;  %s1628_s23 = scalar_lea.hbm %s3278_s1, 256  ;;  %s24_s20 = int_to_ptr.vmem [resolvable:$true] %s23_s20 }
   0xb   :  { %p1629_p3 = scmp.ne.s32.totalorder %s3278_s1, %s1628_s23  ;;  %p1632_p4 = scmp.lt.u32.totalorder %s1628_s23, %s3278_s1 }
   0xd   :  { %p1634_p5 = pnand %p1632_p4, %p1629_p3 }
   0xf   :  { %1637 = shalt.err (!%p1634_p5)
}
  0x10   :  { %s1638_s28 = scalar_lea.vmem %s24_s20, 256  ;;  %p1643_p7 = scmp.lt.s32.totalorder %s24_s20, %s24_s20 }
  0x11   :  { %p1639_p6 = scmp.ne.s32.totalorder %s24_s20, %s1638_s28  ;;  %p1644_p8 = scmp.lt.s32.totalorder %s1638_s28, %s1638_s28 }
  0x13   :  { %p1645_p9 = por %p1644_p8, %p1643_p7 }
  0x15   :  { %p1646_p10 = pnand %p1645_p9, %p1639_p6 }
  0x17   :  { %1649 = shalt.err (!%p1646_p10)
}
  0x18   :  { %s1680_s0 = smov 128   ;;  %s1681_s29 = smov 8  }
  0x19   :  { %29 = dma.hbm_to_vmem [thread:$0]  %s3278_s1, 256, %s24_s20, [#allocation3], %s1680_s0, %s1680_s0, %s1681_s29  }
  0x1a   :  { %1672 = dma.done.wait [#allocation5], 16  }
  0x1b   :  { %1673 = vsyncadd [#allocation5], 4294967280 }
  0x1c   :  { %1674 = dma.done.wait [#allocation3], 256  }
  0x1d   :  { %1675 = vsyncadd [#allocation3], 4294967040 }
  0x1e   :  { %36 = sfence }
  0x1f   :  { %v37_v0 = vld [vmem:[#allocation6] sm:$0xff]  ;;  %v38_v1 = vld [vmem:[#allocation6 + $0x8] sm:$0xff]  ;;  %vm45_vm0 = vcmask 1043456   ;;  %vm106_vm1 = vcmask 1041409   ;;  %vm115_vm2 = vcmask 1043459   ;;  %vm120_vm3 = vcmask 1041408  }
  0x20   :  { %v46_v2 = vsel %vm45_vm0, %v37_v0, 0.0  ;;  %v60_v3 = vsel %vm45_vm0, %v38_v1, 0.0  ;;  %v74_v4 = vsel %vm45_vm0, %v37_v0, -inf  ;;  %v88_v5 = vsel %vm45_vm0, %v38_v1, -inf  ;;  %s1682_s1 = smov 50   ;;  %s1683_s4 = smov 51  }
  0x21   :  { %v47_v6 = vrot.slane %v46_v2, 4  ;;  %v61_v7 = vrot.slane %v60_v3, 4  ;;  %v75_v8 = vrot.slane %v74_v4, 4  ;;  %v89_v9 = vrot.slane %v88_v5, 4  ;;  %s1684_s5 = smov 49   ;;  %s1685_s6 = smov 48  }
  0x22   :  { %v41_v10 = vcombine.high %v37_v0, %v37_v0  ;;  %v42_v11 = vcombine.high %v38_v1, %v38_v1  ;;  %s1686_s7 = smov 47   ;;  %s1687_s8 = smov 46  }
  0x23   :  { %v48_v12 = vadd.f32 %v47_v6, %v46_v2  ;;  %v62_v13 = vadd.f32 %v61_v7, %v60_v3  ;;  %v76_v14 = vmax.f32 %v74_v4, %v75_v8  ;;  %v90_v15 = vmax.f32 %v88_v5, %v89_v9  ;;  %s1688_s9 = smov 45   ;;  %s1689_s10 = smov 35  }
  0x24   :  { %v53_v16 = vsel %vm45_vm0, %v41_v10, 0.0  ;;  %v67_v17 = vsel %vm45_vm0, %v42_v11, 0.0  ;;  %v81_v18 = vsel %vm45_vm0, %v41_v10, -inf  ;;  %v95_v19 = vsel %vm45_vm0, %v42_v11, -inf  ;;  %s1690_s11 = smov 34   ;;  %s1691_s12 = smov 33  }
  0x25   :  { %v49_v20 = vrot.slane %v48_v12, 2  ;;  %v63_v21 = vrot.slane %v62_v13, 2  ;;  %v77_v22 = vrot.slane %v76_v14, 2  ;;  %v91_v23 = vrot.slane %v90_v15, 2  ;;  %s1692_s13 = smov 32   ;;  %s1693_s14 = smov 31  }
  0x26   :  { %v54_v24 = vrot.slane %v53_v16, 4  ;;  %v68_v25 = vrot.slane %v67_v17, 4  ;;  %v82_v26 = vrot.slane %v81_v18, 4  ;;  %v96_v27 = vrot.slane %v95_v19, 4  ;;  %s1694_s15 = smov 30   ;;  %s1695_s16 = smov 29  }
  0x27   :  { %v50_v28 = vadd.f32 %v49_v20, %v48_v12  ;;  %v64_v29 = vadd.f32 %v63_v21, %v62_v13  ;;  %v78_v30 = vmax.f32 %v76_v14, %v77_v22  ;;  %v92_v31 = vmax.f32 %v90_v15, %v91_v23  ;;  %s1696_s17 = smov 19   ;;  %s1697_s18 = smov 18  }
  0x28   :  { %v55_v32 = vadd.f32 %v54_v24, %v53_v16  ;;  %v69_v33 = vadd.f32 %v68_v25, %v67_v17  ;;  %v83_v34 = vmax.f32 %v81_v18, %v82_v26  ;;  %v97_v35 = vmax.f32 %v95_v19, %v96_v27  ;;  %s1698_s19 = smov 17   ;;  %s1699_s20 = smov 16  }
  0x29   :  { %v51_v36 = vrot.slane %v50_v28, 1  ;;  %v65_v37 = vrot.slane %v64_v29, 1  ;;  %v79_v38 = vrot.slane %v78_v30, 1  ;;  %v93_v39 = vrot.slane %v92_v31, 1  ;;  %s1700_s21 = smov 15   ;;  %s1701_s22 = smov 14  }
  0x2a   :  { %v56_v40 = vrot.slane %v55_v32, 2  ;;  %v70_v41 = vrot.slane %v69_v33, 2  ;;  %v84_v42 = vrot.slane %v83_v34, 2  ;;  %v98_v43 = vrot.slane %v97_v35, 2  ;;  %s1702_s23 = smov 13   ;;  %s1703_s24 = smov 3  }
  0x2b   :  { %v52_v44 = vadd.f32 %v51_v36, %v50_v28  ;;  %v66_v45 = vadd.f32 %v65_v37, %v64_v29  ;;  %v80_v46 = vmax.f32 %v78_v30, %v79_v38  ;;  %v94_v47 = vmax.f32 %v92_v31, %v93_v39  ;;  %s1704_s25 = smov 2   ;;  %s1705_s26 = smov 1  }
  0x2c   :  { %v57_v48 = vadd.f32 %v56_v40, %v55_v32  ;;  %v71_v49 = vadd.f32 %v70_v41, %v69_v33  ;;  %v85_v50 = vmax.f32 %v83_v34, %v84_v42  ;;  %v99_v51 = vmax.f32 %v97_v35, %v98_v43  ;;  %s1706_s27 = smov 127   ;;  %s1707_s28 = smov 126  }
  0x2d   :  { %v107_v52 = vsel %vm106_vm1, %v66_v45, %v52_v44  ;;  %v116_v53 = vsel %vm115_vm2, %v94_v47, %v80_v46  ;;  %s1708_s30 = smov 125   ;;  %s1709_s3 = smov 115   ;;  %v221_v2 = vlaneseq }
  0x2e   :  { %v1785_v54 = vsel %vm120_vm3, %v107_v52, %v116_v53  ;;  %v58_v55 = vrot.slane %v57_v48, 1  ;;  %v72_v56 = vrot.slane %v71_v49, 1  ;;  %v86_v57 = vrot.slane %v85_v50, 1 }
  0x2f   :  { %311 = vrot.lane.b32.xlu1 %v1785_v54, %s1682_s1  ;;  %289 = vrot.lane.b32.xlu0 %v1785_v54, %s1683_s4  ;;  %v100_v58 = vrot.slane %v99_v51, 1  ;;  %v1852_v5 = vand.u32 127, %v221_v2  ;;  %v1869_v7 = vshrl.u32 %v221_v2, 7 }
  0x30   :  { %v59_v59 = vadd.f32 %v58_v55, %v57_v48  ;;  %v73_v60 = vadd.f32 %v72_v56, %v71_v49  ;;  %v87_v61 = vmax.f32 %v85_v50, %v86_v57 }
  0x31   :  { %v101_v62 = vmax.f32 %v99_v51, %v100_v58  ;;  %vm315_vm4 = vcmp.lt.s32.totalorder %v1852_v5, 50  ;;  %v1872_v8 = vadd.s32 128, %v1852_v5  ;;  %v1884_v10 = vand.u32 15, %v1852_v5 }
  0x32   :  { %v108_v63 = vsel %vm106_vm1, %v73_v60, %v59_v59  ;;  %vm337_vm5 = vcmp.lt.s32.totalorder %v1852_v5, 49  ;;  %vm223_vm6 = vcmp.lt.s32.totalorder %v1869_v7, 2  ;;  %vm229_vm7 = vcmp.ge.s32.totalorder %v1852_v5, 48 }
  0x33   :  { %333 = vrot.lane.b32.xlu0 %v1785_v54, %s1684_s5  ;;  %v117_v0 = vsel %vm115_vm2, %v101_v62, %v87_v61  ;;  %v1894_v14 = vand.u32 15, %v1872_v8  ;;  %vm359_vm8 = vcmp.lt.s32.totalorder %v1852_v5, 48  ;;  %vm269_vm9 = vcmp.lt.s32.totalorder %v1884_v10, 15 }
  0x34   :  { %v1793_v1 = vsel %vm120_vm3, %v108_v63, %v117_v0  ;;  %vm3285_vm10 = vcmp.ge.s32.totalorder %v1884_v10, 2  ;;  %vm381_vm12 = vcmp.lt.s32.totalorder %v1852_v5, 47  ;;  %vm3280_vm13 = vcmp.ge.s32.totalorder %v1884_v10, 3 }
  0x35   :  { %313 = vrot.lane.b32.xlu1 %v1793_v1, %s1682_s1  ;;  %s1710_s1 = smov 114   ;;  %vm3281_vm11 = vcmp.lt.s32.totalorder %v1894_v14, 15  ;;  %vm293_vm14 = vcmp.lt.s32.totalorder %v1852_v5, 51  ;;  %vm3286_vm15 = vcmp.ge.s32.totalorder %v1894_v14, 2  ;;  %vm3283_vm0 = vcmp.ge.s32.totalorder %v1884_v10, 1 }
  0x36   :  { %vm236_vm1 = vcmp.ge.s32.totalorder %v1894_v14, 3  ;;  %vm277_vm2 = vcmp.lt.s32.totalorder %v1884_v10, 14  ;;  %vm403_vm3 = vcmp.lt.s32.totalorder %v1852_v5, 46 }
  0x37   :  { %355 = vrot.lane.b32.xlu0 %v1785_v54, %s1685_s6 }
  0x39   :  { %335 = vrot.lane.b32.xlu1 %v1793_v1, %s1684_s5  ;;  %s1711_s5 = smov 113  }
  0x3b   :  { %377 = vrot.lane.b32.xlu0 %v1785_v54, %s1686_s7 }
  0x3d   :  { %357 = vrot.lane.b32.xlu1 %v1793_v1, %s1685_s6  ;;  %s1857_s6 = sld [smem:[#allocation2 + $0x32]] }
  0x3f   :  { %291 = vrot.lane.b32.xlu0 %v1793_v1, %s1683_s4  ;;  %s1854_s4 = sld [smem:[#allocation2 + $0x1]] }
  0x41   :  { %379 = vrot.lane.b32.xlu1 %v1793_v1, %s1686_s7  ;;  %s1859_s7 = sld [smem:[#allocation2 + $0x2]] }
  0x43   :  { %399 = vrot.lane.b32.xlu0 %v1785_v54, %s1687_s8  ;;  %v319_v17 = vstv %s1857_s6  ;;  %s2130_s6 = sld [smem:[#allocation2 + $0xb]] }
  0x45   :  { %401 = vrot.lane.b32.xlu1 %v1793_v1, %s1687_s8  ;;  %s1861_s8 = sld [smem:[#allocation2 + $0x33]]  ;;  %v318_v16 = vstv %s1854_s4  ;;  %s1718_s4 = smov 97  }
  0x46   :  { %v320_v30 = vsel %vm223_vm6, %v318_v16, %v319_v17 }
  0x47   :  { %421 = vrot.lane.b32.xlu0 %v1785_v54, %s1688_s9  ;;  %v340_v23 = vstv %s1859_s7  ;;  %s1719_s7 = smov 96  }
  0x49   :  { %423 = vrot.lane.b32.xlu1 %v1793_v1, %s1688_s9  ;;  %s1865_s9 = sld [smem:[#allocation2]] }
  0x4b   :  { %443 = vrot.lane.b32.xlu0 %v1785_v54, %s1689_s10  ;;  %v341_v24 = vstv %s1861_s8  ;;  %s2140_s8 = sld [smem:[#allocation2 + $0x3c]] }
  0x4c   :  { %v1945_v34 = vsel %vm223_vm6, %v340_v23, %v341_v24 }
  0x4d   :  { %445 = vrot.lane.b32.xlu1 %v1793_v1, %s1689_s10  ;;  %s1867_s10 = sld [smem:[#allocation2 + $0x31]] }
  0x4f   :  { %465 = vrot.lane.b32.xlu0 %v1785_v54, %s1690_s11  ;;  %v296_v21 = vstv %s1865_s9  ;;  %s1720_s9 = smov 95  }
  0x51   :  { %467 = vrot.lane.b32.xlu1 %v1793_v1, %s1690_s11  ;;  %s1874_s11 = sld [smem:[#allocation2 + $0x3]] }
  0x53   :  { %487 = vrot.lane.b32.xlu0 %v1785_v54, %s1691_s12  ;;  %v297_v22 = vstv %s1867_s10  ;;  %s2169_s10 = sld [smem:[#allocation2 + $0xc]] }
  0x54   :  { %v298_v33 = vsel %vm223_vm6, %v296_v21, %v297_v22 }
  0x55   :  { %489 = vrot.lane.b32.xlu1 %v1793_v1, %s1691_s12  ;;  %s1876_s12 = sld [smem:[#allocation2 + $0x34]] }
  0x57   :  { %509 = vrot.lane.b32.xlu0 %v1785_v54, %s1692_s13  ;;  %v362_v25 = vstv %s1874_s11  ;;  %s2171_s11 = sld [smem:[#allocation2 + $0x3d]] }
  0x59   :  { %511 = vrot.lane.b32.xlu1 %v1793_v1, %s1692_s13  ;;  %s1712_s13 = smov 112  }
  0x5b   :  { %531 = vrot.lane.b32.xlu0 %v1785_v54, %s1693_s14  ;;  %v363_v26 = vstv %s1876_s12  ;;  %s1721_s12 = smov 94  }
  0x5c   :  { %v1953_v36 = vsel %vm223_vm6, %v362_v25, %v363_v26 }
  0x5d   :  { %533 = vrot.lane.b32.xlu1 %v1793_v1, %s1693_s14  ;;  %s1879_s14 = sld [smem:[#allocation2 + $0x4]] }
  0x5f   :  { %553 = vrot.lane.b32.xlu0 %v1785_v54, %s1694_s15 }
  0x61   :  { %555 = vrot.lane.b32.xlu1 %v1793_v1, %s1694_s15  ;;  %s1881_s15 = sld [smem:[#allocation2 + $0x35]] }
  0x63   :  { %575 = vrot.lane.b32.xlu0 %v1785_v54, %s1695_s16  ;;  %v384_v28 = vstv %s1879_s14  ;;  %s2204_s14 = sld [smem:[#allocation2 + $0x3e]] }
  0x65   :  { %577 = vrot.lane.b32.xlu1 %v1793_v1, %s1695_s16  ;;  %s1713_s16 = smov 111  }
  0x67   :  { %597 = vrot.lane.b32.xlu0 %v1785_v54, %s1696_s17  ;;  %v385_v29 = vstv %s1881_s15  ;;  %s1722_s15 = smov 93  }
  0x68   :  { %v386_v37 = vsel %vm223_vm6, %v384_v28, %v385_v29 }
  0x69   :  { %599 = vrot.lane.b32.xlu1 %v1793_v1, %s1696_s17  ;;  %s1900_s17 = sld [smem:[#allocation2 + $0x5]] }
  0x6b   :  { %619 = vrot.lane.b32.xlu0 %v1785_v54, %s1697_s18 }
  0x6d   :  { %621 = vrot.lane.b32.xlu1 %v1793_v1, %s1697_s18  ;;  %s1902_s18 = sld [smem:[#allocation2 + $0x36]] }
  0x6f   :  { %641 = vrot.lane.b32.xlu0 %v1785_v54, %s1698_s19  ;;  %v406_v44 = vstv %s1900_s17  ;;  %s2226_s17 = sld [smem:[#allocation2 + $0x3f]] }
  0x71   :  { %643 = vrot.lane.b32.xlu1 %v1793_v1, %s1698_s19  ;;  %s1920_s19 = sld [smem:[#allocation2 + $0x6]] }
  0x73   :  { %663 = vrot.lane.b32.xlu0 %v1785_v54, %s1699_s20  ;;  %v407_v45 = vstv %s1902_s18  ;;  %s1723_s18 = smov 83  }
  0x74   :  { %v408_v56 = vsel %vm223_vm6, %v406_v44, %v407_v45 }
  0x75   :  { %665 = vrot.lane.b32.xlu1 %v1793_v1, %s1699_s20  ;;  %s1922_s20 = sld [smem:[#allocation2 + $0x37]] }
  0x77   :  { %685 = vrot.lane.b32.xlu0 %v1785_v54, %s1700_s21  ;;  %v428_v57 = vstv %s1920_s19  ;;  %s2250_s19 = sld [smem:[#allocation2 + $0xf]] }
  0x79   :  { %687 = vrot.lane.b32.xlu1 %v1793_v1, %s1700_s21  ;;  %s1714_s21 = smov 110  }
  0x7b   :  { %707 = vrot.lane.b32.xlu0 %v1785_v54, %s1701_s22  ;;  %v429_v58 = vstv %s1922_s20  ;;  %s2252_s20 = sld [smem:[#allocation2 + $0x40]] }
  0x7d   :  { %709 = vrot.lane.b32.xlu1 %v1793_v1, %s1701_s22  ;;  %s1971_s22 = sld [smem:[#allocation2 + $0x7]] }
  0x7f   :  { %729 = vrot.lane.b32.xlu0 %v1785_v54, %s1702_s23 }
  0x81   :  { %731 = vrot.lane.b32.xlu1 %v1793_v1, %s1702_s23  ;;  %s1973_s23 = sld [smem:[#allocation2 + $0x38]] }
  0x83   :  { %751 = vrot.lane.b32.xlu0 %v1785_v54, %s1703_s24  ;;  %v450_v17 = vstv %s1971_s22  ;;  %s2283_s22 = sld [smem:[#allocation2 + $0x10]] }
  0x85   :  { %753 = vrot.lane.b32.xlu1 %v1793_v1, %s1703_s24  ;;  %s1715_s24 = smov 109  }
  0x87   :  { %773 = vrot.lane.b32.xlu0 %v1785_v54, %s1704_s25 }
  0x89   :  { %775 = vrot.lane.b32.xlu1 %v1793_v1, %s1704_s25  ;;  %s2003_s25 = sld [smem:[#allocation2 + $0x8]] }
  0x8b   :  { %795 = vrot.lane.b32.xlu0 %v1785_v54, %s1705_s26 }
  0x8d   :  { %797 = vrot.lane.b32.xlu1 %v1793_v1, %s1705_s26  ;;  %s2005_s26 = sld [smem:[#allocation2 + $0x39]] }
  0x8f   :  { %832 = vrot.lane.b32.xlu0 %v1785_v54, %s1706_s27  ;;  %v472_v38 = vstv %s2003_s25  ;;  %s2317_s25 = sld [smem:[#allocation2 + $0x11]] }
  0x91   :  { %834 = vrot.lane.b32.xlu1 %v1793_v1, %s1706_s27  ;;  %s1716_s27 = smov 99  }
  0x93   :  { %854 = vrot.lane.b32.xlu0 %v1785_v54, %s1707_s28 }
  0x95   :  { %856 = vrot.lane.b32.xlu1 %v1793_v1, %s1707_s28  ;;  %s2048_s28 = sld [smem:[#allocation2 + $0x9]] }
  0x97   :  { %876 = vrot.lane.b32.xlu0 %v1785_v54, %s1708_s30 }
  0x99   :  { %878 = vrot.lane.b32.xlu1 %v1793_v1, %s1708_s30  ;;  %s1717_s30 = smov 98  }
  0x9b   :  { %898 = vrot.lane.b32.xlu0 %v1785_v54, %s1709_s3 }
  0x9d   :  { %900 = vrot.lane.b32.xlu1 %v1793_v1, %s1709_s3  ;;  %s2067_s3 = sld [smem:[#allocation2 + $0x3a]] }
  0x9f   :  { %920 = vrot.lane.b32.xlu0 %v1785_v54, %s1710_s1 }
  0xa1   :  { %922 = vrot.lane.b32.xlu1 %v1793_v1, %s1710_s1  ;;  %v312_v3 = vpop.permute.xlu1 %311  ;;  %v1850_v4 = vpop.permute.xlu0 %289  ;;  %s2094_s1 = sld [smem:[#allocation2 + $0xa]] }
  0xa3   :  { %942 = vrot.lane.b32.xlu0 %v1785_v54, %s1711_s5 }
  0xa5   :  { %944 = vrot.lane.b32.xlu1 %v1793_v1, %s1711_s5  ;;  %v334_v6 = vpop.permute.xlu0 %333  ;;  %s2105_s5 = sld [smem:[#allocation2 + $0x3b]] }
  0xa7   :  { %v314_v9 = vpop.permute.xlu1 %313  ;;  %964 = vrot.lane.b32.xlu0 %v1785_v54, %s1712_s13 }
  0xa8   :  { %v1886_v11 = vsel %vm315_vm4, %v312_v3, %v314_v9  ;;  %v1888_v12 = vsel %vm315_vm4, %v314_v9, %v312_v3  ;;  %vm1961_vm4 = vmand %vm229_vm7, %vm3280_vm13  ;;  %vm425_vm13 = vcmp.lt.s32.totalorder %v1852_v5, 45 }
  0xa9   :  { %966 = vrot.lane.b32.xlu1 %v1793_v1, %s1712_s13  ;;  %v356_v13 = vpop.permute.xlu0 %355  ;;  %v323_v55 = vmul.f32 %v320_v30, %v1888_v12  ;;  %v324_v60 = vmul.f32 %v320_v30, %v1886_v11  ;;  %v430_v12 = vsel %vm223_vm6, %v428_v57, %v429_v58  ;;  %s2202_s13 = sld [smem:[#allocation2 + $0xd]] }
  0xab   :  { %v336_v15 = vpop.permute.xlu1 %335  ;;  %986 = vrot.lane.b32.xlu0 %v1785_v54, %s1713_s16  ;;  %v330_v21 = vsel %vm3286_vm15, %v324_v60, 0.0 }
  0xac   :  { %v1907_v18 = vsel %vm337_vm5, %v334_v6, %v336_v15  ;;  %v1909_v19 = vsel %vm337_vm5, %v336_v15, %v334_v6  ;;  %vm3284_vm5 = vcmp.ge.s32.totalorder %v1894_v14, 1 }
  0xad   :  { %988 = vrot.lane.b32.xlu1 %v1793_v1, %s1713_s16  ;;  %v378_v20 = vpop.permute.xlu0 %377  ;;  %v345_v16 = vmul.f32 %v1945_v34, %v1909_v19  ;;  %v346_v23 = vmul.f32 %v1945_v34, %v1907_v18  ;;  %s2224_s16 = sld [smem:[#allocation2 + $0xe]] }
  0xaf   :  { %v358_v27 = vpop.permute.xlu1 %357  ;;  %1008 = vrot.lane.b32.xlu0 %v1785_v54, %s1714_s21 }
  0xb0   :  { %v1935_v31 = vsel %vm359_vm8, %v356_v13, %v358_v27  ;;  %v1939_v32 = vsel %vm359_vm8, %v358_v27, %v356_v13  ;;  %vm1983_vm8 = vmand %vm229_vm7, %vm269_vm9 }
  0xb1   :  { %1010 = vrot.lane.b32.xlu1 %v1793_v1, %s1714_s21  ;;  %v292_v35 = vpop.permute.xlu0 %291  ;;  %s1724_s21 = smov 82  }
  0xb2   :  { %v294_v39 = vsel %vm293_vm14, %v1850_v4, %v292_v35  ;;  %v295_v40 = vsel %vm293_vm14, %v292_v35, %v1850_v4  ;;  %vm3282_vm14 = vcmp.lt.s32.totalorder %v1894_v14, 14 }
  0xb3   :  { %v380_v41 = vpop.permute.xlu1 %379  ;;  %v301_v42 = vmul.f32 %v298_v33, %v295_v40  ;;  %v302_v43 = vmul.f32 %v298_v33, %v294_v39  ;;  %1030 = vrot.lane.b32.xlu0 %v1785_v54, %s1715_s24  ;;  %v473_v39 = vstv %s2005_s26  ;;  %v352_v40 = vsel %vm3284_vm5, %v346_v23, 0.0  ;;  %s2319_s26 = sld [smem:[#allocation2 + $0x42]] }
  0xb4   :  { %v382_v47 = vsel %vm381_vm12, %v378_v20, %v380_v41  ;;  %v383_v48 = vsel %vm381_vm12, %v380_v41, %v378_v20  ;;  %vm2011_vm12 = vmand %vm229_vm7, %vm3285_vm10  ;;  %v451_v20 = vstv %s1973_s23  ;;  %v367_v41 = vmul.f32 %v1953_v36, %v1939_v32  ;;  %s2285_s23 = sld [smem:[#allocation2 + $0x41]] }
  0xb5   :  { %v389_v49 = vmul.f32 %v386_v37, %v383_v48  ;;  %v390_v50 = vmul.f32 %v386_v37, %v382_v47  ;;  %v307_v51 = vsel %vm1961_vm4, %v301_v42, 0.0  ;;  %v308_v52 = vsel %vm236_vm1, %v302_v43, 0.0  ;;  %1032 = vrot.lane.b32.xlu1 %v1793_v1, %s1715_s24  ;;  %v400_v53 = vpop.permute.xlu0 %399  ;;  %s1725_s24 = smov 81  }
  0xb6   :  { %vm3287_vm4 = vcmp.lt.s32.totalorder %v1884_v10, 13  ;;  %v329_v15 = vsel %vm2011_vm12, %v323_v55, 0.0  ;;  %v452_v37 = vsel %vm223_vm6, %v450_v17, %v451_v20  ;;  %v494_v55 = vstv %s2048_s28  ;;  %s2350_s28 = sld [smem:[#allocation2 + $0x12]] }
  0xb7   :  { %v395_v61 = vsel %vm1983_vm8, %v389_v49, 0.0  ;;  %v396_v62 = vsel %vm3281_vm11, %v390_v50, 0.0  ;;  %v402_v63 = vpop.permute.xlu1 %401  ;;  %1052 = vrot.lane.b32.xlu0 %v1785_v54, %s1716_s27  ;;  %vm2030_vm8 = vmand %vm229_vm7, %vm277_vm2  ;;  %vm286_vm11 = vcmp.lt.s32.totalorder %v1894_v14, 13 }
  0xb8   :  { %v2022_v0 = vadd.f32 %v395_v61, %v307_v51  ;;  %v2024_v2 = vadd.f32 %v396_v62, %v308_v52  ;;  %v404_v4 = vsel %vm403_vm3, %v400_v53, %v402_v63  ;;  %v405_v6 = vsel %vm403_vm3, %v402_v63, %v400_v53  ;;  %vm2056_vm3 = vmand %vm229_vm7, %vm3283_vm0 }
  0xb9   :  { %v411_v9 = vmul.f32 %v408_v56, %v405_v6  ;;  %v412_v11 = vmul.f32 %v408_v56, %v404_v4  ;;  %1054 = vrot.lane.b32.xlu1 %v1793_v1, %s1716_s27  ;;  %v422_v13 = vpop.permute.xlu0 %421  ;;  %vm2077_vm12 = vmand %vm229_vm7, %vm3287_vm4  ;;  %v351_v35 = vsel %vm2056_vm3, %v345_v16, 0.0  ;;  %v368_v52 = vmul.f32 %v1953_v36, %v1935_v31  ;;  %s1726_s27 = smov 80  }
  0xba   :  { %v474_v53 = vsel %vm223_vm6, %v472_v38, %v473_v39  ;;  %v373_v56 = vsel %vm229_vm7, %v367_v41, 0.0  ;;  %v495_v31 = vstv %s2067_s3  ;;  %v517_v16 = vstv %s2105_s5  ;;  %s1727_s3 = smov 79   ;;  %s1728_s5 = smov 78  }
  0xbb   :  { %v417_v19 = vsel %vm2030_vm8, %v411_v9, 0.0  ;;  %v418_v24 = vsel %vm3282_vm14, %v412_v11, 0.0  ;;  %v424_v25 = vpop.permute.xlu1 %423  ;;  %1074 = vrot.lane.b32.xlu0 %v1785_v54, %s1717_s30  ;;  %vm241_vm8 = vcmp.ge.s32.totalorder %v1852_v5, 32  ;;  %vm447_vm14 = vcmp.lt.s32.totalorder %v1852_v5, 35 }
  0xbc   :  { %v2069_v26 = vadd.f32 %v417_v19, %v329_v15  ;;  %v2071_v27 = vadd.f32 %v418_v24, %v330_v21  ;;  %v426_v28 = vsel %vm425_vm13, %v422_v13, %v424_v25  ;;  %v427_v29 = vsel %vm425_vm13, %v424_v25, %v422_v13  ;;  %vm2150_vm7 = vmand %vm241_vm8, %vm3285_vm10 }
  0xbd   :  { %v433_v30 = vmul.f32 %v430_v12, %v427_v29  ;;  %v434_v33 = vmul.f32 %v430_v12, %v426_v28  ;;  %1076 = vrot.lane.b32.xlu1 %v1793_v1, %s1717_s30  ;;  %v444_v34 = vpop.permute.xlu0 %443  ;;  %vm3300_vm13 = vcmp.ge.s32.totalorder %v1884_v10, 3  ;;  %v496_v9 = vsel %vm223_vm6, %v494_v55, %v495_v31  ;;  %s2352_s30 = sld [smem:[#allocation2 + $0x43]] }
  0xbe   :  { %vm2115_vm3 = vmand %vm241_vm8, %vm3300_vm13  ;;  %v516_v15 = vstv %s2094_s1  ;;  %v538_v29 = vstv %s2130_s6  ;;  %s2383_s1 = sld [smem:[#allocation2 + $0x13]]  ;;  %s2416_s6 = sld [smem:[#allocation2 + $0x14]] }
  0xbf   :  { %v439_v42 = vsel %vm2077_vm12, %v433_v30, 0.0  ;;  %v440_v43 = vsel %vm286_vm11, %v434_v33, 0.0  ;;  %v446_v44 = vpop.permute.xlu1 %445  ;;  %1096 = vrot.lane.b32.xlu0 %v1785_v54, %s1718_s4  ;;  %vm469_vm12 = vcmp.lt.s32.totalorder %v1852_v5, 34  ;;  %vm2183_vm13 = vmand %vm241_vm8, %vm3283_vm0  ;;  %v518_v24 = vsel %vm223_vm6, %v516_v15, %v517_v16 }
  0xc0   :  { %v2107_v45 = vadd.f32 %v439_v42, %v351_v35  ;;  %v2109_v46 = vadd.f32 %v440_v43, %v352_v40  ;;  %v448_v47 = vsel %vm447_vm14, %v444_v34, %v446_v44  ;;  %v449_v48 = vsel %vm447_vm14, %v446_v44, %v444_v34 }
  0xc1   :  { %v455_v49 = vmul.f32 %v452_v37, %v449_v48  ;;  %v456_v50 = vmul.f32 %v452_v37, %v448_v47  ;;  %1098 = vrot.lane.b32.xlu1 %v1793_v1, %s1718_s4  ;;  %v466_v51 = vpop.permute.xlu0 %465  ;;  %vm491_vm14 = vcmp.lt.s32.totalorder %v1852_v5, 33  ;;  %v539_v30 = vstv %s2140_s8  ;;  %s2385_s4 = sld [smem:[#allocation2 + $0x44]]  ;;  %s1729_s8 = smov 77  }
  0xc2   :  { %v540_v41 = vsel %vm223_vm6, %v538_v29, %v539_v30  ;;  %v560_v43 = vstv %s2169_s10  ;;  %v561_v44 = vstv %s2171_s11  ;;  %s2440_s10 = sld [smem:[#allocation2 + $0x46]] }
  0xc3   :  { %v461_v57 = vsel %vm2115_vm3, %v455_v49, 0.0  ;;  %v462_v58 = vsel %vm236_vm1, %v456_v50, 0.0  ;;  %v468_v59 = vpop.permute.xlu1 %467  ;;  %1118 = vrot.lane.b32.xlu0 %v1785_v54, %s1719_s7  ;;  %vm513_vm3 = vcmp.lt.s32.totalorder %v1852_v5, 32  ;;  %s2463_s11 = sld [smem:[#allocation2 + $0x16]] }
  0xc4   :  { %v2142_v36 = vadd.f32 %v461_v57, %v373_v56  ;;  %v2144_v60 = vadd.f32 %v462_v58, %v368_v52  ;;  %v470_v62 = vsel %vm469_vm12, %v466_v51, %v468_v59  ;;  %v471_v63 = vsel %vm469_vm12, %v468_v59, %v466_v51 }
  0xc5   :  { %v477_v3 = vmul.f32 %v474_v53, %v471_v63  ;;  %v478_v4 = vmul.f32 %v474_v53, %v470_v62  ;;  %1120 = vrot.lane.b32.xlu1 %v1793_v1, %s1719_s7  ;;  %v488_v6 = vpop.permute.xlu0 %487  ;;  %vm535_vm12 = vcmp.lt.s32.totalorder %v1852_v5, 31  ;;  %v582_v56 = vstv %s2202_s13  ;;  %s2418_s7 = sld [smem:[#allocation2 + $0x45]]  ;;  %s2484_s13 = sld [smem:[#allocation2 + $0x17]] }
  0xc6   :  { %v583_v57 = vstv %s2204_s14  ;;  %s2486_s14 = sld [smem:[#allocation2 + $0x48]] }
  0xc7   :  { %v483_v11 = vsel %vm2150_vm7, %v477_v3, 0.0  ;;  %v484_v12 = vsel %vm3286_vm15, %v478_v4, 0.0  ;;  %v490_v13 = vpop.permute.xlu1 %489  ;;  %1140 = vrot.lane.b32.xlu0 %v1785_v54, %s1720_s9  ;;  %vm2235_vm7 = vmand %vm241_vm8, %vm269_vm9  ;;  %v584_v3 = vsel %vm223_vm6, %v582_v56, %v583_v57  ;;  %v671_v56 = vstv %s2319_s26  ;;  %s2577_s26 = sld [smem:[#allocation2 + $0x4e]] }
  0xc8   :  { %v2174_v17 = vadd.f32 %v483_v11, %v2022_v0  ;;  %v2177_v20 = vadd.f32 %v484_v12, %v2024_v2  ;;  %v492_v22 = vsel %vm491_vm14, %v488_v6, %v490_v13  ;;  %v493_v0 = vsel %vm491_vm14, %v490_v13, %v488_v6 }
  0xc9   :  { %v499_v23 = vmul.f32 %v496_v9, %v493_v0  ;;  %v500_v19 = vmul.f32 %v496_v9, %v492_v22  ;;  %1142 = vrot.lane.b32.xlu1 %v1793_v1, %s1720_s9  ;;  %v510_v2 = vpop.permute.xlu0 %509  ;;  %vm557_vm14 = vcmp.lt.s32.totalorder %v1852_v5, 30  ;;  %v604_v11 = vstv %s2224_s16  ;;  %s2438_s9 = sld [smem:[#allocation2 + $0x15]]  ;;  %s2507_s16 = sld [smem:[#allocation2 + $0x4a]] }
  0xca   :  { %v605_v12 = vstv %s2226_s17  ;;  %s2524_s17 = sld [smem:[#allocation2 + $0x1a]] }
  0xcb   :  { %v505_v25 = vsel %vm2183_vm13, %v499_v23, 0.0  ;;  %v506_v18 = vsel %vm3284_vm5, %v500_v19, 0.0  ;;  %v512_v28 = vpop.permute.xlu1 %511  ;;  %1162 = vrot.lane.b32.xlu0 %v1785_v54, %s1721_s12  ;;  %vm3309_vm13 = vcmp.lt.s32.totalorder %v1894_v14, 15  ;;  %v606_v23 = vsel %vm223_vm6, %v604_v11, %v605_v12 }
  0xcc   :  { %v2207_v33 = vadd.f32 %v505_v25, %v2069_v26  ;;  %v2210_v34 = vadd.f32 %v506_v18, %v2071_v27  ;;  %v514_v35 = vsel %vm513_vm3, %v510_v2, %v512_v28  ;;  %v515_v37 = vsel %vm513_vm3, %v512_v28, %v510_v2  ;;  %vm2264_vm3 = vmand %vm241_vm8, %vm277_vm2 }
  0xcd   :  { %v521_v38 = vmul.f32 %v518_v24, %v515_v37  ;;  %v522_v39 = vmul.f32 %v518_v24, %v514_v35  ;;  %1164 = vrot.lane.b32.xlu1 %v1793_v1, %s1721_s12  ;;  %v532_v40 = vpop.permute.xlu0 %531  ;;  %v626_v25 = vstv %s2250_s19  ;;  %v627_v18 = vstv %s2252_s20  ;;  %s2465_s12 = sld [smem:[#allocation2 + $0x47]]  ;;  %s2533_s19 = sld [smem:[#allocation2 + $0x18]] }
  0xce   :  { %v693_v11 = vstv %s2352_s30  ;;  %s2535_s20 = sld [smem:[#allocation2 + $0x49]]  ;;  %s2674_s30 = sld [smem:[#allocation2 + $0x1f]] }
  0xcf   :  { %v527_v26 = vsel %vm241_vm8, %v521_v38, 0.0  ;;  %v2219_v42 = vadd.f32 %v522_v39, %v2109_v46  ;;  %v534_v27 = vpop.permute.xlu1 %533  ;;  %1184 = vrot.lane.b32.xlu0 %v1785_v54, %s1722_s15  ;;  %v628_v39 = vsel %vm223_vm6, %v626_v25, %v627_v18 }
  0xd0   :  { %v2229_v32 = vadd.f32 %v527_v26, %v2107_v45  ;;  %v536_v47 = vsel %vm535_vm12, %v532_v40, %v534_v27  ;;  %v537_v48 = vsel %vm535_vm12, %v534_v27, %v532_v40  ;;  %v562_v45 = vsel %vm223_vm6, %v560_v43, %v561_v44 }
  0xd1   :  { %v543_v49 = vmul.f32 %v540_v41, %v537_v48  ;;  %v544_v50 = vmul.f32 %v540_v41, %v536_v47  ;;  %1186 = vrot.lane.b32.xlu1 %v1793_v1, %s1722_s15  ;;  %v554_v51 = vpop.permute.xlu0 %553  ;;  %vm579_vm12 = vcmp.lt.s32.totalorder %v1852_v5, 29  ;;  %v648_v27 = vstv %s2283_s22  ;;  %s2505_s15 = sld [smem:[#allocation2 + $0x19]]  ;;  %s2545_s22 = sld [smem:[#allocation2 + $0x4c]] }
  0xd2   :  { %v649_v43 = vstv %s2285_s23  ;;  %s2558_s23 = sld [smem:[#allocation2 + $0x1c]] }
  0xd3   :  { %v549_v52 = vsel %vm2235_vm7, %v543_v49, 0.0  ;;  %v550_v53 = vsel %vm3309_vm13, %v544_v50, 0.0  ;;  %v556_v55 = vpop.permute.xlu1 %555  ;;  %1206 = vrot.lane.b32.xlu0 %v1785_v54, %s1723_s18  ;;  %vm3312_vm7 = vcmp.lt.s32.totalorder %v1894_v14, 14  ;;  %vm249_vm13 = vcmp.ge.s32.totalorder %v1852_v5, 16 }
  0xd4   :  { %v2255_v58 = vadd.f32 %v549_v52, %v2142_v36  ;;  %v2258_v59 = vadd.f32 %v550_v53, %v2144_v60  ;;  %v558_v61 = vsel %vm557_vm14, %v554_v51, %v556_v55  ;;  %v559_v36 = vsel %vm557_vm14, %v556_v55, %v554_v51  ;;  %vm2297_vm14 = vmand %vm241_vm8, %vm3287_vm4 }
  0xd5   :  { %v565_v62 = vmul.f32 %v562_v45, %v559_v36  ;;  %v566_v63 = vmul.f32 %v562_v45, %v558_v61  ;;  %1208 = vrot.lane.b32.xlu1 %v1793_v1, %s1723_s18  ;;  %v576_v60 = vpop.permute.xlu0 %575  ;;  %vm3315_vm8 = vcmp.ge.s32.totalorder %v1884_v10, 3  ;;  %v650_v51 = vsel %vm223_vm6, %v648_v27, %v649_v43  ;;  %s2526_s18 = sld [smem:[#allocation2 + $0x4b]] }
  0xd6   :  { %v670_v55 = vstv %s2317_s25  ;;  %s2575_s25 = sld [smem:[#allocation2 + $0x1d]] }
  0xd7   :  { %v571_v4 = vsel %vm2264_vm3, %v565_v62, 0.0  ;;  %v572_v6 = vsel %vm3312_vm7, %v566_v63, 0.0  ;;  %v578_v9 = vpop.permute.xlu1 %577  ;;  %1228 = vrot.lane.b32.xlu0 %v1785_v54, %s1724_s21  ;;  %vm601_vm3 = vcmp.lt.s32.totalorder %v1852_v5, 19  ;;  %vm623_vm7 = vcmp.lt.s32.totalorder %v1852_v5, 18 }
  0xd8   :  { %v2288_v13 = vadd.f32 %v571_v4, %v2174_v17  ;;  %v2291_v15 = vadd.f32 %v572_v6, %v2177_v20  ;;  %v580_v21 = vsel %vm579_vm12, %v576_v60, %v578_v9  ;;  %v581_v17 = vsel %vm579_vm12, %v578_v9, %v576_v60  ;;  %vm2331_vm12 = vmand %vm249_vm13, %vm3315_vm8 }
  0xd9   :  { %v587_v22 = vmul.f32 %v584_v3, %v581_v17  ;;  %v588_v0 = vmul.f32 %v584_v3, %v580_v21  ;;  %1230 = vrot.lane.b32.xlu1 %v1793_v1, %s1724_s21  ;;  %v598_v20 = vpop.permute.xlu0 %597  ;;  %vm2397_vm8 = vmand %vm249_vm13, %vm3283_vm0  ;;  %v672_v60 = vsel %vm223_vm6, %v670_v55, %v671_v56  ;;  %v692_v9 = vstv %s2350_s28  ;;  %s2543_s21 = sld [smem:[#allocation2 + $0x1b]]  ;;  %s2596_s28 = sld [smem:[#allocation2 + $0x4f]] }
  0xdb   :  { %v593_v19 = vsel %vm2297_vm14, %v587_v22, 0.0  ;;  %v594_v2 = vsel %vm286_vm11, %v588_v0, 0.0  ;;  %v600_v24 = vpop.permute.xlu1 %599  ;;  %1250 = vrot.lane.b32.xlu0 %v1785_v54, %s1725_s24  ;;  %vm2364_vm14 = vmand %vm249_vm13, %vm3285_vm10 }
  0xdc   :  { %v2322_v28 = vadd.f32 %v593_v19, %v2207_v33  ;;  %v2325_v29 = vadd.f32 %v594_v2, %v2210_v34  ;;  %v602_v35 = vsel %vm601_vm3, %v598_v20, %v600_v24  ;;  %v603_v33 = vsel %vm601_vm3, %v600_v24, %v598_v20 }
  0xdd   :  { %v609_v37 = vmul.f32 %v606_v23, %v603_v33  ;;  %v610_v38 = vmul.f32 %v606_v23, %v602_v35  ;;  %1252 = vrot.lane.b32.xlu1 %v1793_v1, %s1725_s24  ;;  %v620_v34 = vpop.permute.xlu0 %619  ;;  %vm645_vm3 = vcmp.lt.s32.totalorder %v1852_v5, 17  ;;  %v694_v23 = vsel %vm223_vm6, %v692_v9, %v693_v11  ;;  %s2560_s24 = sld [smem:[#allocation2 + $0x4d]] }
  0xde   :  { %v714_v2 = vstv %s2383_s1  ;;  %v715_v24 = vstv %s2385_s4  ;;  %s2680_s1 = sld [smem:[#allocation2 + $0x20]]  ;;  %s2682_s4 = sld [smem:[#allocation2 + $0x51]] }
  0xdf   :  { %v615_v40 = vsel %vm2331_vm12, %v609_v37, 0.0  ;;  %v616_v41 = vsel %vm236_vm1, %v610_v38, 0.0  ;;  %v622_v26 = vpop.permute.xlu1 %621  ;;  %1272 = vrot.lane.b32.xlu0 %v1785_v54, %s1726_s27  ;;  %vm667_vm12 = vcmp.lt.s32.totalorder %v1852_v5, 16 }
  0xe0   :  { %v2355_v44 = vadd.f32 %v615_v40, %v2229_v32  ;;  %v2358_v46 = vadd.f32 %v616_v41, %v2219_v42  ;;  %v624_v48 = vsel %vm623_vm7, %v620_v34, %v622_v26  ;;  %v625_v32 = vsel %vm623_vm7, %v622_v26, %v620_v34 }
  0xe1   :  { %v631_v49 = vmul.f32 %v628_v39, %v625_v32  ;;  %v632_v50 = vmul.f32 %v628_v39, %v624_v48  ;;  %1274 = vrot.lane.b32.xlu1 %v1793_v1, %s1726_s27  ;;  %v642_v42 = vpop.permute.xlu0 %641  ;;  %vm689_vm7 = vcmp.lt.s32.totalorder %v1852_v5, 15  ;;  %v736_v40 = vstv %s2416_s6  ;;  %s2594_s27 = sld [smem:[#allocation2 + $0x1e]]  ;;  %s2686_s6 = sld [smem:[#allocation2 + $0x52]] }
  0xe2   :  { %v737_v41 = vstv %s2418_s7  ;;  %s2690_s7 = sld [smem:[#allocation2 + $0x22]] }
  0xe3   :  { %v637_v45 = vsel %vm2364_vm14, %v631_v49, 0.0  ;;  %v638_v52 = vsel %vm3286_vm15, %v632_v50, 0.0  ;;  %v644_v53 = vpop.permute.xlu1 %643  ;;  %1294 = vrot.lane.b32.xlu0 %v1785_v54, %s1727_s3  ;;  %vm2449_vm14 = vmand %vm249_vm13, %vm269_vm9  ;;  %v738_v50 = vsel %vm223_vm6, %v736_v40, %v737_v41 }
  0xe4   :  { %v2388_v57 = vadd.f32 %v637_v45, %v2255_v58  ;;  %v2391_v31 = vadd.f32 %v638_v52, %v2258_v59  ;;  %v646_v36 = vsel %vm645_vm3, %v642_v42, %v644_v53  ;;  %v647_v58 = vsel %vm645_vm3, %v644_v53, %v642_v42 }
  0xe5   :  { %v653_v62 = vmul.f32 %v650_v51, %v647_v58  ;;  %v654_v63 = vmul.f32 %v650_v51, %v646_v36  ;;  %1296 = vrot.lane.b32.xlu1 %v1793_v1, %s1727_s3  ;;  %v664_v59 = vpop.permute.xlu0 %663  ;;  %vm711_vm3 = vcmp.lt.s32.totalorder %v1852_v5, 14  ;;  %v758_v51 = vstv %s2438_s9  ;;  %s2676_s3 = sld [smem:[#allocation2 + $0x50]]  ;;  %s2694_s9 = sld [smem:[#allocation2 + $0x23]] }
  0xe6   :  { %v759_v45 = vstv %s2440_s10  ;;  %s2696_s10 = sld [smem:[#allocation2 + $0x54]] }
  0xe7   :  { %v659_v3 = vsel %vm2397_vm8, %v653_v62, 0.0  ;;  %v660_v4 = vsel %vm3284_vm5, %v654_v63, 0.0  ;;  %v666_v6 = vpop.permute.xlu1 %665  ;;  %1316 = vrot.lane.b32.xlu0 %v1785_v54, %s1728_s5  ;;  %vm3324_vm8 = vcmp.lt.s32.totalorder %v1894_v14, 15  ;;  %v760_v62 = vsel %vm223_vm6, %v758_v51, %v759_v45 }
  0xe8   :  { %v2421_v12 = vadd.f32 %v659_v3, %v2288_v13  ;;  %v2424_v16 = vadd.f32 %v660_v4, %v2291_v15  ;;  %v668_v21 = vsel %vm667_vm12, %v664_v59, %v666_v6  ;;  %v669_v17 = vsel %vm667_vm12, %v666_v6, %v664_v59  ;;  %vm717_vm12 = vmand %vm249_vm13, %vm277_vm2 }
  0xe9   :  { %v675_v22 = vmul.f32 %v672_v60, %v669_v17  ;;  %v676_v0 = vmul.f32 %v672_v60, %v668_v21  ;;  %1318 = vrot.lane.b32.xlu1 %v1793_v1, %s1728_s5  ;;  %v686_v20 = vpop.permute.xlu0 %685  ;;  %v780_v59 = vstv %s2463_s11  ;;  %v781_v60 = vstv %s2465_s12  ;;  %s2684_s5 = sld [smem:[#allocation2 + $0x21]]  ;;  %s2700_s11 = sld [smem:[#allocation2 + $0x24]] }
  0xea   :  { %s2702_s12 = sld [smem:[#allocation2 + $0x55]] }
  0xeb   :  { %v681_v13 = vsel %vm249_vm13, %v675_v22, 0.0  ;;  %v2433_v19 = vadd.f32 %v676_v0, %v2325_v29  ;;  %v688_v15 = vpop.permute.xlu1 %687  ;;  %1338 = vrot.lane.b32.xlu0 %v1785_v54, %s1729_s8  ;;  %v782_v22 = vsel %vm223_vm6, %v780_v59, %v781_v60 }
  0xec   :  { %v2443_v25 = vadd.f32 %v681_v13, %v2322_v28  ;;  %v690_v29 = vsel %vm689_vm7, %v686_v20, %v688_v15  ;;  %v691_v30 = vsel %vm689_vm7, %v688_v15, %v686_v20  ;;  %v716_v28 = vsel %vm223_vm6, %v714_v2, %v715_v24 }
  0xed   :  { %v697_v35 = vmul.f32 %v694_v23, %v691_v30  ;;  %v698_v33 = vmul.f32 %v694_v23, %v690_v29  ;;  %1340 = vrot.lane.b32.xlu1 %v1793_v1, %s1729_s8  ;;  %v708_v37 = vpop.permute.xlu0 %707  ;;  %vm733_vm7 = vcmp.lt.s32.totalorder %v1852_v5, 13  ;;  %v802_v23 = vstv %s2484_s13  ;;  %s2692_s8 = sld [smem:[#allocation2 + $0x53]]  ;;  %s2706_s13 = sld [smem:[#allocation2 + $0x25]] }
  0xef   :  { %v703_v38 = vsel %vm2449_vm14, %v697_v35, 0.0  ;;  %v704_v34 = vsel %vm3324_vm8, %v698_v33, 0.0  ;;  %v710_v39 = vpop.permute.xlu1 %709  ;;  %vm3325_vm14 = vcmp.lt.s32.totalorder %v1894_v14, 14  ;;  %vm755_vm8 = vcmp.lt.s32.totalorder %v1852_v5, 3 }
  0xf0   :  { %v2468_v26 = vadd.f32 %v703_v38, %v2355_v44  ;;  %v2471_v27 = vadd.f32 %v704_v34, %v2358_v46  ;;  %v712_v43 = vsel %vm711_vm3, %v708_v37, %v710_v39  ;;  %v713_v47 = vsel %vm711_vm3, %v710_v39, %v708_v37  ;;  %vm739_vm3 = vmand %vm249_vm13, %vm3287_vm4 }
  0xf1   :  { %v719_v48 = vmul.f32 %v716_v28, %v713_v47  ;;  %v720_v32 = vmul.f32 %v716_v28, %v712_v43  ;;  %v730_v49 = vpop.permute.xlu0 %729  ;;  %vm777_vm13 = vcmp.lt.s32.totalorder %v1852_v5, 2  ;;  %v839_v37 = vstv %s2505_s15  ;;  %s2710_s15 = sld [smem:[#allocation2 + $0x26]] }
  0xf2   :  { %v840_v28 = vstv %s2507_s16  ;;  %s2712_s16 = sld [smem:[#allocation2 + $0x57]] }
  0xf3   :  { %v725_v44 = vsel %vm717_vm12, %v719_v48, 0.0  ;;  %v726_v46 = vsel %vm3325_vm14, %v720_v32, 0.0  ;;  %v732_v42 = vpop.permute.xlu1 %731  ;;  %vm3326_vm12 = vcmp.ge.s32.totalorder %v1884_v10, 3  ;;  %vm836_vm14 = vcmp.lt.s32.totalorder %v1852_v5, 127 }
  0xf4   :  { %v2489_v52 = vadd.f32 %v725_v44, %v2388_v57  ;;  %v2492_v53 = vadd.f32 %v726_v46, %v2391_v31  ;;  %v734_v55 = vsel %vm733_vm7, %v730_v49, %v732_v42  ;;  %v735_v56 = vsel %vm733_vm7, %v732_v42, %v730_v49 }
  0xf5   :  { %v741_v61 = vmul.f32 %v738_v50, %v735_v56  ;;  %v742_v36 = vmul.f32 %v738_v50, %v734_v55  ;;  %v752_v58 = vpop.permute.xlu0 %751  ;;  %vm799_vm7 = vcmp.lt.s32.totalorder %v1852_v5, 1  ;;  %v841_v48 = vsel %vm223_vm6, %v839_v37, %v840_v28 }
  0xf6   :  { %v862_v50 = vstv %s2526_s18  ;;  %s2718_s18 = sld [smem:[#allocation2 + $0x58]] }
  0xf7   :  { %v747_v57 = vsel %vm739_vm3, %v741_v61, 0.0  ;;  %v748_v31 = vsel %vm286_vm11, %v742_v36, 0.0  ;;  %v754_v63 = vpop.permute.xlu1 %753  ;;  %vm858_vm3 = vcmp.lt.s32.totalorder %v1852_v5, 126  ;;  %v817_v36 = vstv %s2533_s19  ;;  %s2720_s19 = sld [smem:[#allocation2 + $0x28]] }
  0xf8   :  { %v2510_v3 = vadd.f32 %v747_v57, %v2421_v12  ;;  %v2513_v4 = vadd.f32 %v748_v31, %v2424_v16  ;;  %v756_v6 = vsel %vm755_vm8, %v752_v58, %v754_v63  ;;  %v757_v9 = vsel %vm755_vm8, %v754_v63, %v752_v58 }
  0xf9   :  { %v763_v11 = vmul.f32 %v760_v62, %v757_v9  ;;  %v764_v21 = vmul.f32 %v760_v62, %v756_v6  ;;  %v774_v17 = vpop.permute.xlu0 %773  ;;  %v803_v16 = vstv %s2486_s14  ;;  %v818_v58 = vstv %s2535_s20  ;;  %s2708_s14 = sld [smem:[#allocation2 + $0x56]]  ;;  %s2722_s20 = sld [smem:[#allocation2 + $0x59]] }
  0xfa   :  { %v804_v35 = vsel %vm223_vm6, %v802_v23, %v803_v16  ;;  %vm3327_vm8 = vcmp.lt.s32.totalorder %v1894_v14, 15  ;;  %v884_v31 = vstv %s2545_s22  ;;  %v905_v23 = vstv %s2558_s23  ;;  %s2728_s22 = sld [smem:[#allocation2 + $0x5a]] }
  0xfb   :  { %v769_v0 = vsel %vm3326_vm12, %v763_v11, 0.0  ;;  %v770_v12 = vsel %vm236_vm1, %v764_v21, 0.0  ;;  %v776_v20 = vpop.permute.xlu1 %775  ;;  %vm3328_vm12 = vcmp.lt.s32.totalorder %v1894_v14, 14  ;;  %v906_v16 = vstv %s2560_s24  ;;  %s2730_s23 = sld [smem:[#allocation2 + $0x2a]]  ;;  %s2732_s24 = sld [smem:[#allocation2 + $0x5b]] }
  0xfc   :  { %v771_v13 = vadd.f32 %v769_v0, %v2443_v25  ;;  %v772_v15 = vadd.f32 %v770_v12, %v2433_v19  ;;  %v778_v2 = vsel %vm777_vm13, %v774_v17, %v776_v20  ;;  %v779_v24 = vsel %vm777_vm13, %v776_v20, %v774_v17 }
  0xfd   :  { %v785_v18 = vmul.f32 %v782_v22, %v779_v24  ;;  %v786_v29 = vmul.f32 %v782_v22, %v778_v2  ;;  %v796_v30 = vpop.permute.xlu0 %795  ;;  %vm880_vm13 = vcmp.lt.s32.totalorder %v1852_v5, 125  ;;  %v819_v22 = vsel %vm223_vm6, %v817_v36, %v818_v58 }
  0xff   :  { %v791_v33 = vsel %vm3285_vm10, %v785_v18, 0.0  ;;  %v792_v19 = vsel %vm3286_vm15, %v786_v29, 0.0  ;;  %v798_v25 = vpop.permute.xlu1 %797 }
 0x100   :  { %v793_v38 = vadd.f32 %v791_v33, %v2468_v26  ;;  %v794_v34 = vadd.f32 %v792_v19, %v2471_v27  ;;  %v800_v39 = vsel %vm799_vm7, %v796_v30, %v798_v25  ;;  %v801_v40 = vsel %vm799_vm7, %v798_v25, %v796_v30 }
 0x101   :  { %v807_v41 = vmul.f32 %v804_v35, %v801_v40  ;;  %v808_v43 = vmul.f32 %v804_v35, %v800_v39  ;;  %v833_v47 = vpop.permute.xlu0 %832  ;;  %v861_v27 = vstv %s2524_s17  ;;  %vm266_vm7 = vcmp.lt.s32.totalorder %v1872_v8, 240  ;;  %s2716_s17 = sld [smem:[#allocation2 + $0x27]] }
 0x102   :  { %v863_v61 = vsel %vm223_vm6, %v861_v27, %v862_v50  ;;  %v822_v35 = vmul.f32 %v819_v22, %v1785_v54  ;;  %v907_v33 = vsel %vm223_vm6, %v905_v23, %v906_v16  ;;  %v823_v19 = vmul.f32 %v819_v22, %v1793_v1 }
 0x103   :  { %v813_v32 = vsel %vm3283_vm0, %v807_v41, 0.0  ;;  %v814_v49 = vsel %vm3284_vm5, %v808_v43, 0.0  ;;  %v835_v26 = vpop.permute.xlu1 %834 }
 0x104   :  { %v815_v44 = vadd.f32 %v813_v32, %v2489_v52  ;;  %v816_v46 = vadd.f32 %v814_v49, %v2492_v53  ;;  %v837_v42 = vsel %vm836_vm14, %v833_v47, %v835_v26  ;;  %v838_v51 = vsel %vm836_vm14, %v835_v26, %v833_v47 }
 0x105   :  { %v844_v45 = vmul.f32 %v841_v48, %v837_v42  ;;  %v845_v55 = vmul.f32 %v841_v48, %v838_v51  ;;  %v855_v56 = vpop.permute.xlu0 %854  ;;  %v883_v53 = vstv %s2543_s21  ;;  %vm902_vm14 = vcmp.lt.s32.totalorder %v1852_v5, 115  ;;  %s2726_s21 = sld [smem:[#allocation2 + $0x29]] }
 0x106   :  { %v885_v17 = vsel %vm223_vm6, %v883_v53, %v884_v31  ;;  %v830_v32 = vadd.f32 %v822_v35, %v2510_v3  ;;  %v831_v49 = vadd.f32 %v823_v19, %v2513_v4  ;;  %v950_v42 = vstv %s2596_s28  ;;  %s2750_s28 = sld [smem:[#allocation2 + $0x5d]] }
 0x107   :  { %v850_v62 = vsel %vm269_vm9, %v844_v45, 0.0  ;;  %v851_v52 = vsel %vm3327_vm8, %v845_v55, 0.0  ;;  %v857_v57 = vpop.permute.xlu1 %856  ;;  %vm924_vm8 = vcmp.lt.s32.totalorder %v1852_v5, 114  ;;  %v993_v35 = vstv %s2680_s1  ;;  %s2784_s1 = sld [smem:[#allocation2 + $0x2e]] }
 0x108   :  { %v2579_v63 = vadd.f32 %v850_v62, %v771_v13  ;;  %v2581_v59 = vadd.f32 %v851_v52, %v772_v15  ;;  %v859_v60 = vsel %vm858_vm3, %v855_v56, %v857_v57  ;;  %v860_v6 = vsel %vm858_vm3, %v857_v57, %v855_v56  ;;  %vm2618_vm3 = vmand %vm266_vm7, %vm236_vm1 }
 0x109   :  { %v866_v9 = vmul.f32 %v863_v61, %v859_v60  ;;  %v867_v11 = vmul.f32 %v863_v61, %v860_v6  ;;  %v877_v21 = vpop.permute.xlu0 %876 }
 0x10b   :  { %v872_v0 = vsel %vm277_vm2, %v866_v9, 0.0  ;;  %v873_v12 = vsel %vm3328_vm12, %v867_v11, 0.0  ;;  %v879_v20 = vpop.permute.xlu1 %878  ;;  %vm931_vm12 = vmand %vm266_vm7, %vm3286_vm15 }
 0x10c   :  { %v874_v13 = vadd.f32 %v872_v0, %v793_v38  ;;  %v875_v15 = vadd.f32 %v873_v12, %v794_v34  ;;  %v881_v2 = vsel %vm880_vm13, %v877_v21, %v879_v20  ;;  %v882_v24 = vsel %vm880_vm13, %v879_v20, %v877_v21 }
 0x10d   :  { %v888_v18 = vmul.f32 %v885_v17, %v881_v2  ;;  %v889_v29 = vmul.f32 %v885_v17, %v882_v24  ;;  %v899_v30 = vpop.permute.xlu0 %898  ;;  %v927_v38 = vstv %s2575_s25  ;;  %v928_v34 = vstv %s2577_s26  ;;  %s2740_s25 = sld [smem:[#allocation2 + $0x2b]]  ;;  %s2742_s26 = sld [smem:[#allocation2 + $0x5c]] }
 0x10e   :  { %v929_v26 = vsel %vm223_vm6, %v927_v38, %v928_v34  ;;  %vm3331_vm13 = vcmp.ge.s32.totalorder %v1884_v10, 3  ;;  %v1038_v38 = vstv %s2692_s8  ;;  %s2815_s8 = sld [smem:[#allocation2 + $0x61]] }
 0x10f   :  { %v894_v25 = vsel %vm3287_vm4, %v888_v18, 0.0  ;;  %v895_v37 = vsel %vm286_vm11, %v889_v29, 0.0  ;;  %v901_v28 = vpop.permute.xlu1 %900  ;;  %v971_v29 = vstv %s2674_s30  ;;  %s2775_s30 = sld [smem:[#allocation2 + $0x2d]] }
 0x110   :  { %v2610_v39 = vadd.f32 %v894_v25, %v815_v44  ;;  %v2612_v40 = vadd.f32 %v895_v37, %v816_v46  ;;  %v903_v1 = vsel %vm902_vm14, %v899_v30, %v901_v28  ;;  %v904_v41 = vsel %vm902_vm14, %v901_v28, %v899_v30 }
 0x111   :  { %v910_v43 = vmul.f32 %v907_v33, %v903_v1  ;;  %v911_v47 = vmul.f32 %v907_v33, %v904_v41  ;;  %v921_v48 = vpop.permute.xlu0 %920  ;;  %v949_v46 = vstv %s2594_s27  ;;  %vm946_vm14 = vcmp.lt.s32.totalorder %v1852_v5, 113  ;;  %s2748_s27 = sld [smem:[#allocation2 + $0x2c]] }
 0x112   :  { %v951_v36 = vsel %vm223_vm6, %v949_v46, %v950_v42  ;;  %v972_v30 = vstv %s2676_s3  ;;  %v994_v33 = vstv %s2682_s4  ;;  %v1015_v25 = vstv %s2684_s5  ;;  %s2782_s3 = sld [smem:[#allocation2 + $0x5e]]  ;;  %s2792_s4 = sld [smem:[#allocation2 + $0x5f]] }
 0x113   :  { %v916_v27 = vsel %vm3331_vm13, %v910_v43, 0.0  ;;  %v917_v50 = vsel %vm2618_vm3, %v911_v47, 0.0  ;;  %v923_v44 = vpop.permute.xlu1 %922  ;;  %vm953_vm3 = vmand %vm266_vm7, %vm3284_vm5  ;;  %v1016_v37 = vstv %s2686_s6  ;;  %v1037_v28 = vstv %s2690_s7  ;;  %s2794_s5 = sld [smem:[#allocation2 + $0x2f]]  ;;  %s2801_s6 = sld [smem:[#allocation2 + $0x60]] }
 0x114   :  { %v2633_v51 = vadd.f32 %v916_v27, %v830_v32  ;;  %v2635_v45 = vadd.f32 %v917_v50, %v831_v49  ;;  %v925_v3 = vsel %vm924_vm8, %v921_v48, %v923_v44  ;;  %v926_v4 = vsel %vm924_vm8, %v923_v44, %v921_v48  ;;  %s2813_s7 = sld [smem:[#allocation2 + $0x30]] }
 0x115   :  { %v932_v55 = vmul.f32 %v929_v26, %v925_v3  ;;  %v933_v56 = vmul.f32 %v929_v26, %v926_v4  ;;  %v943_v61 = vpop.permute.xlu0 %942  ;;  %vm968_vm8 = vcmp.lt.s32.totalorder %v1852_v5, 112  ;;  %v2757_v54 = vsel %vm223_vm6, %v971_v29, %v972_v30 }
 0x116   :  { %vm990_vm13 = vcmp.lt.s32.totalorder %v1852_v5, 111  ;;  %v2762_v1 = vsel %vm223_vm6, %v993_v35, %v994_v33  ;;  %v2767_v41 = vsel %vm223_vm6, %v1015_v25, %v1016_v37  ;;  %v2771_v43 = vsel %vm223_vm6, %v1037_v28, %v1038_v38 }
 0x117   :  { %v938_v58 = vsel %vm3285_vm10, %v932_v55, 0.0  ;;  %v939_v62 = vsel %vm931_vm12, %v933_v56, 0.0  ;;  %v945_v52 = vpop.permute.xlu1 %944  ;;  %vm1012_vm12 = vcmp.lt.s32.totalorder %v1852_v5, 110  ;;  %v1059_v48 = vstv %s2694_s9  ;;  %s1731_s9 = smov [#allocation7]  }
 0x118   :  { %v2647_v57 = vadd.f32 %v938_v58, %v2579_v63  ;;  %v2650_v53 = vadd.f32 %v939_v62, %v2581_v59  ;;  %v947_v31 = vsel %vm946_vm14, %v943_v61, %v945_v52  ;;  %v948_v60 = vsel %vm946_vm14, %v945_v52, %v943_v61 }
 0x119   :  { %v954_v6 = vmul.f32 %v951_v36, %v947_v31  ;;  %v955_v9 = vmul.f32 %v951_v36, %v948_v60  ;;  %v2656_v11 = vpop.permute.xlu0 %964  ;;  %vm1034_vm14 = vcmp.lt.s32.totalorder %v1852_v5, 109  ;;  %v1060_v32 = vstv %s2696_s10  ;;  %s1440_s10 = sshll.u32 %s1731_s9, 4  ;;  %s1441_s10 = int_to_ptr.vmem [resolvable:$true] %s1440_s10 }
 0x11a   :  { %v1081_v49 = vstv %s2700_s11  ;;  %v1082_v26 = vstv %s2702_s12  ;;  %v1103_v27 = vstv %s2706_s13  ;;  %v1104_v50 = vstv %s2708_s14  ;;  %s1650_s11 = scalar_lea.vmem %s1441_s10, 256  ;;  %p1655_p12 = scmp.lt.s32.totalorder %s1441_s10, %s1441_s10 }
 0x11b   :  { %v960_v21 = vsel %vm3283_vm0, %v954_v6, 0.0  ;;  %v961_v17 = vsel %vm953_vm3, %v955_v9, 0.0  ;;  %v2660_v63 = vpop.permute.xlu1 %966  ;;  %v1125_v46 = vstv %s2710_s15  ;;  %v1126_v42 = vstv %s2712_s16  ;;  %p1651_p11 = scmp.ne.s32.totalorder %s1441_s10, %s1650_s11  ;;  %p1656_p13 = scmp.lt.s32.totalorder %s1650_s11, %s1650_s11 }
 0x11c   :  { %v2662_v22 = vadd.f32 %v960_v21, %v874_v13  ;;  %v2664_v59 = vadd.f32 %v961_v17, %v875_v15  ;;  %vm1056_vm3 = vcmp.lt.s32.totalorder %v1852_v5, 99  ;;  %v1147_v3 = vstv %s2716_s17 }
 0x11d   :  { %v2666_v0 = vpop.permute.xlu0 %986  ;;  %v1148_v4 = vstv %s2718_s18  ;;  %v1169_v55 = vstv %s2720_s19  ;;  %v1170_v56 = vstv %s2722_s20  ;;  %v1191_v36 = vstv %s2726_s21  ;;  %p1657_p0 = por %p1656_p13, %p1655_p12 }
 0x11e   :  { %v1192_v58 = vstv %s2728_s22  ;;  %v1213_v62 = vstv %s2730_s23  ;;  %v1214_v52 = vstv %s2732_s24  ;;  %v1235_v31 = vstv %s2740_s25 }
 0x11f   :  { %v2668_v12 = vpop.permute.xlu1 %988  ;;  %v1236_v60 = vstv %s2742_s26  ;;  %v1257_v6 = vstv %s2748_s27  ;;  %v1258_v9 = vstv %s2750_s28  ;;  %v2819_v21 = vsel %vm223_vm6, %v1059_v48, %v1060_v32  ;;  %p1658_p1 = pnand %p1657_p0, %p1651_p11 }
 0x120   :  { %vm1078_vm0 = vcmp.lt.s32.totalorder %v1852_v5, 98  ;;  %v2824_v17 = vsel %vm223_vm6, %v1081_v49, %v1082_v26  ;;  %v2828_v29 = vsel %vm223_vm6, %v1103_v27, %v1104_v50  ;;  %vm1100_vm5 = vcmp.lt.s32.totalorder %v1852_v5, 97 }
 0x121   :  { %v2670_v20 = vpop.permute.xlu0 %1008  ;;  %v2835_v35 = vsel %vm223_vm6, %v1125_v46, %v1126_v42  ;;  %v2839_v33 = vsel %vm223_vm6, %v1147_v3, %v1148_v4  ;;  %v2843_v25 = vsel %vm223_vm6, %v1169_v55, %v1170_v56  ;;  %v2847_v37 = vsel %vm223_vm6, %v1191_v36, %v1192_v58 }
 0x122   :  { %v970_v28 = vsel %vm968_vm8, %v2660_v63, %v2656_v11  ;;  %v2857_v48 = vsel %vm223_vm6, %v1213_v62, %v1214_v52  ;;  %v2861_v32 = vsel %vm223_vm6, %v1235_v31, %v1236_v60  ;;  %v2865_v49 = vsel %vm223_vm6, %v1257_v6, %v1258_v9 }
 0x123   :  { %v2672_v23 = vpop.permute.xlu1 %1010  ;;  %v969_v26 = vsel %vm968_vm8, %v2656_v11, %v2660_v63  ;;  %v991_v27 = vsel %vm990_vm13, %v2666_v0, %v2668_v12  ;;  %vm274_vm10 = vcmp.lt.s32.totalorder %v1872_v8, 224  ;;  %v1279_v50 = vstv %s2775_s30 }
 0x124   :  { %v1280_v46 = vstv %s2782_s3  ;;  %v992_v42 = vsel %vm990_vm13, %v2668_v12, %v2666_v0  ;;  %v1301_v4 = vstv %s2784_s1  ;;  %v1302_v55 = vstv %s2792_s4 }
 0x125   :  { %v2678_v16 = vpop.permute.xlu0 %1030  ;;  %v1323_v11 = vstv %s2794_s5  ;;  %v977_v63 = vmul.f32 %v2757_v54, %v970_v28  ;;  %v1013_v56 = vsel %vm1012_vm12, %v2670_v20, %v2672_v23  ;;  %v1014_v36 = vsel %vm1012_vm12, %v2672_v23, %v2670_v20 }
 0x126   :  { %v1324_v0 = vstv %s2801_s6  ;;  %v976_v12 = vmul.f32 %v2757_v54, %v969_v26  ;;  %v998_v58 = vmul.f32 %v2762_v1, %v991_v27  ;;  %v999_v23 = vmul.f32 %v2762_v1, %v992_v42 }
 0x127   :  { %v2688_v13 = vpop.permute.xlu1 %1032  ;;  %v2915_v54 = vsel %vm223_vm6, %v1279_v50, %v1280_v46  ;;  %v1345_v31 = vstv %s2813_s7  ;;  %v1346_v60 = vstv %s2815_s8  ;;  %vm3332_vm13 = vcmp.lt.s32.totalorder %v1894_v14, 15 }
 0x128   :  { %v1035_v62 = vsel %vm1034_vm14, %v2678_v16, %v2688_v13  ;;  %v1036_v52 = vsel %vm1034_vm14, %v2688_v13, %v2678_v16  ;;  %vm2923_vm8 = vmand %vm266_vm7, %vm3332_vm13  ;;  %v1020_v16 = vmul.f32 %v2767_v41, %v1013_v56  ;;  %v1021_v13 = vmul.f32 %v2767_v41, %v1014_v36 }
 0x129   :  { %v2698_v15 = vpop.permute.xlu0 %1052  ;;  %v2937_v28 = vsel %vm223_vm6, %v1301_v4, %v1302_v55  ;;  %v983_v26 = vsel %vm266_vm7, %v977_v63, 0.0  ;;  %vm3335_vm14 = vcmp.lt.s32.totalorder %v1894_v14, 14  ;;  %v1042_v27 = vmul.f32 %v2771_v43, %v1035_v62 }
 0x12a   :  { %vm2945_vm13 = vmand %vm266_vm7, %vm3335_vm14  ;;  %v1043_v50 = vmul.f32 %v2771_v43, %v1036_v52  ;;  %vm1188_vm12 = vcmp.lt.s32.totalorder %v1852_v5, 93  ;;  %v2954_v46 = vsel %vm223_vm6, %v1323_v11, %v1324_v0  ;;  %v984_v42 = vadd.f32 %v976_v12, %v2610_v39 }
 0x12b   :  { %v2704_v2 = vpop.permute.xlu1 %1054  ;;  %v1004_v4 = vsel %vm269_vm9, %v998_v58, 0.0  ;;  %vm2963_vm14 = vmand %vm266_vm7, %vm286_vm11  ;;  %v2975_v39 = vsel %vm223_vm6, %v1345_v31, %v1346_v60  ;;  %v1005_v63 = vsel %vm2923_vm8, %v999_v23, 0.0  ;;  %vm1210_vm7 = vcmp.lt.s32.totalorder %v1852_v5, 83 }
 0x12c   :  { %v1057_v1 = vsel %vm1056_vm3, %v2698_v15, %v2704_v2  ;;  %v1058_v43 = vsel %vm1056_vm3, %v2704_v2, %v2698_v15  ;;  %v985_v2 = vadd.f32 %v983_v26, %v2612_v40  ;;  %v1026_v0 = vsel %vm277_vm2, %v1020_v16, 0.0  ;;  %vm3028_vm8 = vmand %vm274_vm10, %vm3286_vm15 }
 0x12d   :  { %v2714_v24 = vpop.permute.xlu0 %1074  ;;  %v1064_v56 = vmul.f32 %v2819_v21, %v1057_v1  ;;  %v1027_v12 = vsel %vm2945_vm13, %v1021_v13, 0.0  ;;  %v1006_v52 = vadd.f32 %v1004_v4, %v2633_v51  ;;  %v1049_v40 = vsel %vm2963_vm14, %v1043_v50, 0.0 }
 0x12e   :  { %vm1232_vm6 = vcmp.lt.s32.totalorder %v1852_v5, 82  ;;  %v1007_v23 = vadd.f32 %v1005_v63, %v2635_v45  ;;  %v1028_v45 = vadd.f32 %v1026_v0, %v2647_v57  ;;  %v1029_v16 = vadd.f32 %v1027_v12, %v2650_v53 }
 0x12f   :  { %v2724_v18 = vpop.permute.xlu1 %1076  ;;  %vm3342_vm3 = vcmp.ge.s32.totalorder %v1884_v10, 3  ;;  %v1051_v57 = vadd.f32 %v1049_v40, %v2664_v59  ;;  %vm3345_vm13 = vcmp.lt.s32.totalorder %v1852_v5, 96  ;;  %vm3346_vm14 = vcmp.lt.s32.totalorder %v1852_v5, 95 }
 0x130   :  { %v1079_v36 = vsel %vm1078_vm0, %v2714_v24, %v2724_v18  ;;  %v1080_v15 = vsel %vm1078_vm0, %v2724_v18, %v2714_v24  ;;  %v1048_v24 = vsel %vm3287_vm4, %v1042_v27, 0.0  ;;  %v1065_v18 = vmul.f32 %v2819_v21, %v1058_v43  ;;  %vm3010_vm0 = vmand %vm274_vm10, %vm236_vm1 }
 0x131   :  { %v2738_v19 = vpop.permute.xlu0 %1096  ;;  %v1086_v51 = vmul.f32 %v2824_v17, %v1079_v36  ;;  %v1087_v60 = vmul.f32 %v2824_v17, %v1080_v15  ;;  %v1070_v13 = vsel %vm3342_vm3, %v1064_v56, 0.0  ;;  %vm3347_vm3 = vmmov %vm3346_vm14  ;;  %vm1254_vm15 = vcmp.lt.s32.totalorder %v1852_v5, 81 }
 0x132   :  { %v1071_v41 = vsel %vm3010_vm0, %v1065_v18, 0.0  ;;  %v1072_v50 = vadd.f32 %v1070_v13, %v984_v42  ;;  %vm3350_vm0 = vcmp.ge.s32.totalorder %v1894_v14, 1 }
 0x133   :  { %v2752_v34 = vpop.permute.xlu1 %1098  ;;  %v1093_v55 = vsel %vm3028_vm8, %v1087_v60, 0.0  ;;  %vm3064_vm4 = vmand %vm274_vm10, %vm3350_vm0  ;;  %vm3355_vm8 = vcmp.lt.s32.totalorder %v1852_v5, 96  ;;  %v1073_v36 = vadd.f32 %v1071_v41, %v985_v2 }
 0x134   :  { %v1101_v58 = vsel %vm1100_vm5, %v2738_v19, %v2752_v34  ;;  %v1102_v21 = vsel %vm1100_vm5, %v2752_v34, %v2738_v19  ;;  %vm282_vm5 = vcmp.lt.s32.totalorder %v1872_v8, 208  ;;  %v1050_v19 = vadd.f32 %v1048_v24, %v2662_v22 }
 0x135   :  { %v2773_v47 = vpop.permute.xlu0 %1118  ;;  %v1108_v17 = vmul.f32 %v2828_v29, %v1101_v58  ;;  %v1109_v27 = vmul.f32 %v2828_v29, %v1102_v21  ;;  %v1095_v58 = vadd.f32 %v1093_v55, %v1007_v23 }
 0x137   :  { %v2788_v44 = vpop.permute.xlu1 %1120 }
 0x138   :  { %v1124_v53 = vsel %vm3345_vm13, %v2788_v44, %v2773_v47  ;;  %vm3348_vm13 = vcmp.lt.s32.totalorder %v1852_v5, 94  ;;  %v1123_v43 = vsel %vm3355_vm8, %v2773_v47, %v2788_v44  ;;  %v1115_v47 = vsel %vm3064_vm4, %v1109_v27, 0.0 }
 0x139   :  { %v2803_v61 = vpop.permute.xlu0 %1140  ;;  %v1131_v63 = vmul.f32 %v2835_v35, %v1124_v53  ;;  %v1130_v24 = vmul.f32 %v2835_v35, %v1123_v43  ;;  %vm3359_vm8 = vcmp.lt.s32.totalorder %v1894_v14, 14  ;;  %vm1320_vm4 = vcmp.lt.s32.totalorder %v1852_v5, 78 }
 0x13a   :  { %vm3104_vm0 = vmand %vm274_vm10, %vm3359_vm8  ;;  %v3124_v60 = vadd.f32 %v1115_v47, %v1029_v16  ;;  %vm3374_vm8 = vcmp.ge.s32.totalorder %v1884_v10, 2 }
 0x13b   :  { %v2830_v30 = vpop.permute.xlu1 %1142  ;;  %v1137_v35 = vsel %vm274_vm10, %v1131_v63, 0.0  ;;  %v1138_v16 = vadd.f32 %v1130_v24, %v1050_v19 }
 0x13c   :  { %v1145_v34 = vsel %vm3346_vm14, %v2803_v61, %v2830_v30  ;;  %v1146_v22 = vsel %vm3347_vm3, %v2830_v30, %v2803_v61  ;;  %vm3349_vm14 = vcmp.ge.s32.totalorder %v1884_v10, 2  ;;  %vm3353_vm3 = vmmov %vm3348_vm13 }
 0x13d   :  { %v2853_v38 = vpop.permute.xlu0 %1162  ;;  %v1092_v4 = vsel %vm3349_vm14, %v1086_v51, 0.0  ;;  %vm3354_vm14 = vcmp.ge.s32.totalorder %v1884_v10, 1  ;;  %v1152_v56 = vmul.f32 %v2839_v33, %v1145_v34  ;;  %v1153_v15 = vmul.f32 %v2839_v33, %v1146_v22 }
 0x13e   :  { %v1114_v42 = vsel %vm3354_vm14, %v1108_v17, 0.0  ;;  %v1094_v12 = vadd.f32 %v1092_v4, %v1006_v52  ;;  %v1139_v17 = vadd.f32 %v1137_v35, %v1051_v57 }
 0x13f   :  { %v2882_v3 = vpop.permute.xlu1 %1164  ;;  %v1116_v2 = vadd.f32 %v1114_v42, %v1028_v45  ;;  %v1158_v23 = vsel %vm269_vm9, %v1152_v56, 0.0 }
 0x140   :  { %v1167_v59 = vsel %vm3348_vm13, %v2853_v38, %v2882_v3  ;;  %v1168_v29 = vsel %vm3353_vm3, %v2882_v3, %v2853_v38  ;;  %vm1298_vm13 = vcmp.lt.s32.totalorder %v1852_v5, 79  ;;  %vm3356_vm3 = vcmp.lt.s32.totalorder %v1894_v14, 15 }
 0x141   :  { %v2910_v20 = vpop.permute.xlu0 %1184  ;;  %v1174_v38 = vmul.f32 %v2843_v25, %v1167_v59  ;;  %vm3094_vm14 = vmand %vm274_vm10, %vm3356_vm3  ;;  %v1175_v33 = vmul.f32 %v2843_v25, %v1168_v29  ;;  %v1160_v53 = vadd.f32 %v1158_v23, %v1072_v50 }
 0x143   :  { %v2933_v9 = vpop.permute.xlu1 %1186  ;;  %v1181_v13 = vsel %vm3104_vm0, %v1175_v33, 0.0  ;;  %vm3366_vm0 = vcmp.lt.s32.totalorder %v1884_v10, 13 }
 0x144   :  { %v1189_v3 = vsel %vm1188_vm12, %v2910_v20, %v2933_v9  ;;  %v1190_v31 = vsel %vm1188_vm12, %v2933_v9, %v2910_v20  ;;  %vm3143_vm12 = vmand %vm282_vm5, %vm236_vm1  ;;  %v1183_v57 = vadd.f32 %v1181_v13, %v1095_v58  ;;  %vm3368_vm1 = vcmp.ge.s32.totalorder %v1894_v14, 2 }
 0x145   :  { %v2971_v11 = vpop.permute.xlu0 %1206  ;;  %v1196_v51 = vmul.f32 %v2847_v37, %v1189_v3  ;;  %v1197_v34 = vmul.f32 %v2847_v37, %v1190_v31  ;;  %vm3172_vm3 = vmand %vm282_vm5, %vm3368_vm1 }
 0x147   :  { %v1209_v62 = vpop.permute.xlu1 %1208  ;;  %v1202_v37 = vsel %vm3366_vm0, %v1196_v51, 0.0 }
 0x148   :  { %v1211_v40 = vsel %vm1210_vm7, %v2971_v11, %v1209_v62  ;;  %v1212_v18 = vsel %vm1210_vm7, %v1209_v62, %v2971_v11  ;;  %v1159_v11 = vsel %vm3094_vm14, %v1153_v15, 0.0  ;;  %v1180_v62 = vsel %vm277_vm2, %v1174_v38, 0.0 }
 0x149   :  { %v1229_v6 = vpop.permute.xlu0 %1228  ;;  %v1218_v1 = vmul.f32 %v2857_v48, %v1211_v40  ;;  %v1219_v20 = vmul.f32 %v2857_v48, %v1212_v18  ;;  %vm1342_vm7 = vcmp.lt.s32.totalorder %v1852_v5, 77  ;;  %v1161_v48 = vadd.f32 %v1159_v11, %v1073_v36 }
 0x14a   :  { %v1182_v22 = vadd.f32 %v1180_v62, %v1094_v12  ;;  %v1204_v43 = vadd.f32 %v1202_v37, %v1116_v2 }
 0x14b   :  { %v1231_v26 = vpop.permute.xlu1 %1230  ;;  %v1225_v61 = vsel %vm3143_vm12, %v1219_v20, 0.0  ;;  %vm3376_vm12 = vcmp.ge.s32.totalorder %v1894_v14, 1 }
 0x14c   :  { %v1233_v21 = vsel %vm1232_vm6, %v1229_v6, %v1231_v26  ;;  %v1234_v9 = vsel %vm1232_vm6, %v1231_v26, %v1229_v6  ;;  %vm3152_vm6 = vmand %vm274_vm10, %vm286_vm11  ;;  %vm3367_vm10 = vcmp.ge.s32.totalorder %v1884_v10, 3  ;;  %v1227_v47 = vadd.f32 %v1225_v61, %v1139_v17 }
 0x14d   :  { %v1251_v30 = vpop.permute.xlu0 %1250  ;;  %v1240_v19 = vmul.f32 %v2861_v32, %v1233_v21  ;;  %v1241_v26 = vmul.f32 %v2861_v32, %v1234_v9  ;;  %v1224_v55 = vsel %vm3367_vm10, %v1218_v1, 0.0  ;;  %v1203_v42 = vsel %vm3152_vm6, %v1197_v34, 0.0  ;;  %vm3204_vm6 = vmand %vm282_vm5, %vm3376_vm12 }
 0x14e   :  { %v1226_v58 = vadd.f32 %v1224_v55, %v1138_v16  ;;  %vm3380_vm10 = vcmp.lt.s32.totalorder %v1894_v14, 14  ;;  %v1205_v41 = vadd.f32 %v1203_v42, %v3124_v60 }
 0x14f   :  { %v1253_v0 = vpop.permute.xlu1 %1252  ;;  %v1246_v38 = vsel %vm3374_vm8, %v1240_v19, 0.0  ;;  %v1247_v44 = vsel %vm3172_vm3, %v1241_v26, 0.0  ;;  %vm3218_vm1 = vmand %vm282_vm5, %vm3380_vm10 }
 0x150   :  { %v1255_v59 = vsel %vm1254_vm15, %v1251_v30, %v1253_v0  ;;  %v1256_v50 = vsel %vm1254_vm15, %v1253_v0, %v1251_v30  ;;  %vm3371_vm15 = vcmp.lt.s32.totalorder %v1894_v14, 15  ;;  %v1249_v11 = vadd.f32 %v1247_v44, %v1161_v48 }
 0x151   :  { %v1273_v25 = vpop.permute.xlu0 %1272  ;;  %vm3186_vm14 = vmand %vm282_vm5, %vm3371_vm15  ;;  %v1262_v3 = vmul.f32 %v2865_v49, %v1255_v59  ;;  %v1263_v0 = vmul.f32 %v2865_v49, %v1256_v50 }
 0x153   :  { %v1275_v45 = vpop.permute.xlu1 %1274  ;;  %v1269_v21 = vsel %vm3204_vm6, %v1263_v0, 0.0 }
 0x154   :  { %v1271_v37 = vadd.f32 %v1269_v21, %v1183_v57 }
 0x155   :  { %v1295_v27 = vpop.permute.xlu0 %1294 }
 0x157   :  { %v1297_v4 = vpop.permute.xlu1 %1296 }
 0x158   :  { %v1299_v32 = vsel %vm1298_vm13, %v1295_v27, %v1297_v4  ;;  %v1300_v30 = vsel %vm1298_vm13, %v1297_v4, %v1295_v27  ;;  %vm3375_vm13 = vcmp.lt.s32.totalorder %v1852_v5, 80 }
 0x159   :  { %v1306_v56 = vmul.f32 %v2937_v28, %v1299_v32  ;;  %v1307_v36 = vmul.f32 %v2937_v28, %v1300_v30  ;;  %v1317_v15 = vpop.permute.xlu0 %1316  ;;  %v1278_v12 = vsel %vm3375_vm13, %v1275_v45, %v1273_v25  ;;  %vm3379_vm0 = vmmov %vm3375_vm13  ;;  %v1413_v28 = vsub.s32 0, %v1869_v7 }
 0x15a   :  { %v1277_v33 = vsel %vm3379_vm0, %v1273_v25, %v1275_v45  ;;  %v1248_v25 = vadd.f32 %v1246_v38, %v1160_v53  ;;  %v1285_v35 = vmul.f32 %v2915_v54, %v1278_v12 }
 0x15b   :  { %v1319_v49 = vpop.permute.xlu1 %1318  ;;  %v1312_v2 = vsel %vm269_vm9, %v1306_v56, 0.0  ;;  %v1313_v24 = vsel %vm3186_vm14, %v1307_v36, 0.0  ;;  %vm3383_vm9 = vcmp.ge.s32.totalorder %v1884_v10, 1  ;;  %v1284_v45 = vmul.f32 %v2915_v54, %v1277_v33 }
 0x15c   :  { %v1321_v40 = vsel %vm1320_vm4, %v1317_v15, %v1319_v49  ;;  %v1322_v18 = vsel %vm1320_vm4, %v1319_v49, %v1317_v15  ;;  %v1268_v62 = vsel %vm3383_vm9, %v1262_v3, 0.0  ;;  %v1314_v13 = vadd.f32 %v1312_v2, %v1226_v58  ;;  %vm3242_vm4 = vmand %vm282_vm5, %vm286_vm11 }
 0x15d   :  { %v1328_v23 = vmul.f32 %v2954_v46, %v1321_v40  ;;  %v1329_v31 = vmul.f32 %v2954_v46, %v1322_v18  ;;  %v1339_v51 = vpop.permute.xlu0 %1338  ;;  %v1315_v1 = vadd.f32 %v1313_v24, %v1227_v47  ;;  %v1291_v27 = vsel %vm282_vm5, %v1285_v35, 0.0 }
 0x15e   :  { %v1270_v6 = vadd.f32 %v1268_v62, %v1182_v22  ;;  %vm3386_vm11 = vcmp.lt.s32.totalorder %v1884_v10, 13  ;;  %v1292_v50 = vadd.f32 %v1284_v45, %v1204_v43  ;;  %v1293_v4 = vadd.f32 %v1291_v27, %v1205_v41 }
 0x15f   :  { %v1334_v20 = vsel %vm277_vm2, %v1328_v23, 0.0  ;;  %v1335_v9 = vsel %vm3218_vm1, %v1329_v31, 0.0  ;;  %v1341_v16 = vpop.permute.xlu1 %1340  ;;  %v1730_v43 = vmov 1966171168   ;;  %v1417_v33 = vsub.s32 1, %v1869_v7  ;;  %v1616_v31 = vld [vmem:[#allocation6] sm:$0xff] }
 0x160   :  { %v1336_v46 = vadd.f32 %v1334_v20, %v1248_v25  ;;  %v1337_v17 = vadd.f32 %v1335_v9, %v1249_v11  ;;  %v1343_v54 = vsel %vm1342_vm7, %v1339_v51, %v1341_v16  ;;  %v1344_v34 = vsel %vm1342_vm7, %v1341_v16, %v1339_v51  ;;  %v1617_v11 = vld [vmem:[#allocation6 + $0x8] sm:$0xff] }
 0x161   :  { %v1350_v48 = vmul.f32 %v2975_v39, %v1343_v54  ;;  %v1351_v14 = vmul.f32 %v2975_v39, %v1344_v34  ;;  %v1390_v38 = vunpack.c.l.s4 %v1730_v43 }
 0x162   :  { %v1362_v19 = vadd.f32 %v1336_v46, %v1314_v13  ;;  %v1363_v26 = vadd.f32 %v1337_v17, %v1315_v1 }
 0x163   :  { %v1356_v59 = vsel %vm3386_vm11, %v1350_v48, 0.0  ;;  %v1357_v5 = vsel %vm3242_vm4, %v1351_v14, 0.0  ;;  %v1391_v3 = vunpack.c.0.s8 %v1390_v38 }
 0x164   :  { %v1358_v60 = vadd.f32 %v1356_v59, %v1270_v6  ;;  %v1359_v55 = vadd.f32 %v1357_v5, %v1271_v37 }
 0x165   :  { %v1394_v12 = vsub.s32 %v1391_v3, %v1869_v7 }
 0x166   :  { %v1360_v8 = vadd.f32 %v1358_v60, %v1292_v50  ;;  %v1361_v61 = vadd.f32 %v1359_v55, %v1293_v4 }
 0x168   :  { %v1364_v29 = vadd.f32 %v1362_v19, %v1360_v8  ;;  %v1365_v32 = vadd.f32 %v1363_v26, %v1361_v61 }
 0x16a   :  { %v1368_v30 = vrot.slane %v1364_v29, 2  ;;  %v1369_v39 = vrot.slane %v1365_v32, 2 }
 0x16c   :  { %v1372_v22 = vadd.f32 %v1368_v30, %v1364_v29  ;;  %v1373_v57 = vadd.f32 %v1369_v39, %v1365_v32 }
 0x16e   :  { %v1550_v42 = vmul.f32 -1.442695, %v1372_v22  ;;  %v1551_v63 = vmul.f32 -1.442695, %v1373_v57 }
 0x170   :  { %1608 = vpow2.f32 %v1550_v42 }
 0x171   :  { %1610 = vpow2.f32 %v1551_v63 }
 0x17a   :  { %v1609_v10 = vpop.eup %1608 }
 0x17b   :  { %v1611_v56 = vpop.eup %1610  ;;  %v1380_v36 = vadd.f32 1.0, %v1609_v10 }
 0x17c   :  { %v1381_v15 = vadd.f32 1.0, %v1611_v56 }
 0x17d   :  { %1612 = vrcp.f32 %v1380_v36 }
 0x17e   :  { %1614 = vrcp.f32 %v1381_v15 }
 0x187   :  { %v1613_v0 = vpop.eup %1612 }
 0x188   :  { %v1615_v58 = vpop.eup %1614 }
 0x189   :  { %v1388_v47 = vcombine.low %v1613_v0, %v1615_v58 }
 0x18b   :  { %v1395_v44 = vrot.slane %v1388_v47, %v1394_v12 }
 0x18d   :  { %v1396_v49 = vcombine.high %v1395_v44, %v1395_v44  ;;  %v1403_v2 = vrot.slane %v1395_v44, %v1394_v12 }
 0x18f   :  { %v1410_v24 = vrot.slane %v1396_v49, %v1394_v12  ;;  %v1414_v52 = vrot.slane %v1403_v2, %v1413_v28  ;;  %v1418_v40 = vrot.slane %v1403_v2, %v1417_v33 }
 0x191   :  { %v1422_v18 = vrot.slane %v1410_v24, %v1413_v28  ;;  %v1426_v25 = vrot.slane %v1410_v24, %v1417_v33  ;;  %v1427_v35 = vcombine.low %v1414_v52, %v1418_v40 }
 0x193   :  { %v1428_v23 = vcombine.low %v1422_v18, %v1426_v25  ;;  %v1431_v51 = vmul.f32 %v1616_v31, %v1427_v35 }
 0x195   :  { %v1432_v62 = vmul.f32 %v1617_v11, %v1428_v23  ;;  %1433 = vst [vmem:[#allocation7] sm:$0xff] %v1431_v51 }
 0x197   :  { %1434 = vst [vmem:[#allocation7 + $0x8] sm:$0xff] %v1432_v62 }
 0x198   :  { %1661 = shalt.err (!%p1658_p1)
}
 0x199   :  { %s1662_s14 = scalar_lea.hbm %s3279_s2, 256 }
 0x19a   :  { %p1663_p2 = scmp.ne.s32.totalorder %s3279_s2, %s1662_s14  ;;  %p1666_p3 = scmp.lt.u32.totalorder %s1662_s14, %s3279_s2 }
 0x19c   :  { %p1668_p4 = pnand %p1666_p3, %p1663_p2 }
 0x19e   :  { %1671 = shalt.err (!%p1668_p4)
}
 0x19f   :  { %1446 = dma.vmem_to_hbm [thread:$0]  %s1441_s10, 256, %s3279_s2, [#allocation4], %s1680_s0, %s1680_s0, %s1681_s29  }
 0x1a0   :  { %1676 = dma.done.wait [#allocation4], 256  }
 0x1a1   :  { %1677 = vsyncadd [#allocation4], 4294967040 }
 0x1a2   :  { %1450 = vsyncpa [#allocation3], 1 }
 0x1a3   :  { %1451 = vsyncpa [#allocation4], 1 }
 0x1a4   :  { %1452 = vsyncpa [#allocation5], 1 }

</bundles_post_ra>
